<compile_context>
chip_gen: v6e
topology: v6e:2x2x1
jax: 0.10.0
libtpu: 0.0.40
codegen_flags: <defaults>
</compile_context>

<pallas_src>
import math

import jax
import jax.numpy as jnp
import numpy as np
from jax.experimental import pallas as pl
from jax.experimental.pallas import tpu as pltpu


# ----------------------------------------------------------------------------
# Level configuration (torch MaxPool2d semantics)
# ----------------------------------------------------------------------------
def _level_cfg(prev, n):
    """kernel / stride / padding / output-size for one pyramid level."""
    if n == 6 and prev == 10:
        # special case in the reference module: MaxPool2d(kernel=2, stride=2, padding=1)
        k, s, p = 2, 2, 1
    else:
        k = int(math.ceil(prev / n))
        s = int(math.floor(prev / n))
        p = 0
    n_out = (prev + 2 * p - k) // s + 1
    # robustness: every window must contain >= 1 valid (non-padded) element,
    # otherwise the clamped-window max below would be undefined.
    for i in range(n_out):
        lo = i * s - p
        assert lo < prev and lo + k > 0, (
            f"empty pooling window for prev={prev}, n={n} (i={i})")
    return k, s, p, n_out


# ----------------------------------------------------------------------------
# Kernel
# ----------------------------------------------------------------------------
def _make_spp_kernel(cfgs, H, W):
    """Kernel over one (H, W, L) lane-packed block -> (total, L) output slab.

    L = Bt * C sits on the 128-lane axis; W sits on sublanes."""

    def spp_kernel(x_ref, o_ref):
        off = 0
        for (k, s, p, n_out) in cfgs:
            cache = {}                       # h -> (W, L) row slab already loaded
            for i in range(n_out):
                h_lo = i * s - p
                # evict rows that can never be reused by this or later windows
                for h in list(cache.keys()):
                    if h < h_lo:
                        del cache[h]
                # --- pool over H: running elementwise max of full-width row
                #     slabs (pure VPU); out-of-range rows are skipped, which is
                #     equivalent to torch's implicit -inf padding ---
                rowmax = None
                for di in range(k):
                    h = h_lo + di
                    if 0 <= h < H:
                        if h not in cache:
                            cache[h] = x_ref[h, :, :]          # (W, L)
                        sl = cache[h]
                        rowmax = sl if rowmax is None else jnp.maximum(rowmax, sl)
                # --- pool over W: one small sublane reduce per window, then a
                #     single contiguous store for the whole output row ---
                outs = []
                for j in range(n_out):
                    w0 = max(0, j * s - p)
                    w1 = min(W, j * s - p + k)
                    outs.append(jnp.max(rowmax[w0:w1, :], axis=0, keepdims=True))
                row_block = outs[0] if n_out == 1 else jnp.concatenate(outs, axis=0)
                o_ref[pl.ds(off + i * n_out, n_out), :] = row_block
            off += n_out * n_out

    return spp_kernel


# ----------------------------------------------------------------------------
# Tiling / VMEM budgeting
# ----------------------------------------------------------------------------
def _round_up(x, m):
    return ((x + m - 1) // m) * m


def _vmem_budget_and_limit():
    """(tile budget bytes, vmem_limit_bytes) derived from physical VMEM."""
    cap = 64 * 1024 * 1024                          # conservative fallback (v7x)
    try:
        cap = int(pltpu.get_tpu_info().vmem_capacity_bytes)
    except Exception:
        pass
    if cap >= 100 * 1024 * 1024:                    # v5e / v6e (128 MiB per TC)
        return 80 * 1024 * 1024, 100 * 1024 * 1024
    # v7x (64 MiB per TC) / unknown: leave headroom for compiler scratch.
    return 24 * 1024 * 1024, 48 * 1024 * 1024


def _pick_block_batch(B, C, H, W, total, itemsize, budget_bytes, max_k):
    """Largest batch-tile Bt (divisor of B) whose *padded* double-buffered
    in+out tiles plus compute scratch fit the budget.  Bt*C must be a multiple
    of 128 (lane tiling) unless Bt == B (full-extent block)."""
    sub = {4: 8, 2: 16, 1: 32}.get(itemsize, 8)     # sublane multiple per dtype
    w_pad = _round_up(W, sub)
    t_pad = _round_up(total, sub)

    def padded_bytes(bt):
        lanes = _round_up(bt * C, 128)
        in_b = H * w_pad * lanes * itemsize
        out_b = t_pad * lanes * itemsize
        # a few live row slabs + per-row output block as compute scratch
        scratch = (max_k + 3) * w_pad * lanes * itemsize
        return 2 * (in_b + out_b) + scratch         # 2x: double-buffered pipeline

    def in_bytes(bt):
        return H * w_pad * _round_up(bt * C, 128) * itemsize

    cands = [d for d in range(1, B + 1)
             if B % d == 0 and ((d * C) % 128 == 0 or d == B)]
    feasible = [d for d in cands if padded_bytes(d) <= budget_bytes]
    if not feasible:
        feasible = [min(cands)]                     # smallest legal tile
    # Prefer >= 2 balanced grid steps (keeps both v7x TensorCores busy) only
    # when each step still moves enough data to hide per-step overhead.
    MIN_STEP_BYTES = 1 * 1024 * 1024
    multi = [d for d in feasible if B // d >= 2 and in_bytes(d) >= MIN_STEP_BYTES]
    return max(multi) if multi else max(feasible)


# ----------------------------------------------------------------------------
# Wrapper
# ----------------------------------------------------------------------------
def spatial_pyramid_pool(x, out_pool_size=(6, 3, 2, 1), previous_conv_size=None):
    """JAX/Pallas equivalent of Spatial_pyramid_pool.forward.

    x: (B, C, H, W) like the PyTorch module; returns (B, C * sum(n*n))."""
    B, C, H, W = x.shape
    assert H == W, "module assumes square previous conv feature maps"
    prev = H if previous_conv_size is None else previous_conv_size

    cfgs = [_level_cfg(prev, n) for n in out_pool_size]
    total = sum(c[3] * c[3] for c in cfgs)
    max_k = max(c[0] for c in cfgs)
    itemsize = jnp.dtype(x.dtype).itemsize

    budget, vmem_limit = _vmem_budget_and_limit()
    bt = _pick_block_batch(B, C, H, W, total, itemsize, budget, max_k)
    L = bt * C

    # Single layout transform: (B,C,H,W) -> (H,W,B,C) -> (H,W,B*C).
    # Lanes carry Bt*C (lane-dense even for small C); W sits on sublanes.
    x_hwl = jnp.transpose(x, (2, 3, 0, 1)).reshape(H, W, B * C)

    kernel = _make_spp_kernel(cfgs, H, W)
    out = pl.pallas_call(
        kernel,
        out_shape=jax.ShapeDtypeStruct((total, B * C), x.dtype),
        grid_spec=pltpu.PrefetchScalarGridSpec(
            num_scalar_prefetch=0,
            grid=(B // bt,),
            in_specs=[pl.BlockSpec((H, W, L), lambda b: (0, 0, b))],
            out_specs=pl.BlockSpec((total, L), lambda b: (0, b)),
        ),
        compiler_params=pltpu.CompilerParams(
            dimension_semantics=("parallel",),
            vmem_limit_bytes=vmem_limit,
        ),
    )(x_hwl)                                           # (total, B*C)

    # Torch-order glue (tiny; fused by XLA when this wrapper is jitted).
    # Each level is flattened channel-major (c, i, j) like temp.view(B, -1),
    # then levels are concatenated.
    out = out.reshape(total, B, C)
    parts = []
    off = 0
    for (_, _, _, n) in cfgs:
        lvl = out[off:off + n * n]                     # (n*n, B, C)
        parts.append(jnp.transpose(lvl, (1, 2, 0)).reshape(B, -1))
        off += n * n
    return jnp.concatenate(parts, axis=1)


# ----------------------------------------------------------------------------
# Pure-numpy reference replicating the PyTorch forward exactly
# ----------------------------------------------------------------------------
def _reference_spp(x_np, out_pool_size, prev):
    B, C, H, W = x_np.shape
    parts = []
    for n in out_pool_size:
        k, s, p, n_out = _level_cfg(prev, n)
        xp = (np.pad(x_np, ((0, 0), (0, 0), (p, p), (p, p)),
                     constant_values=-np.inf) if p > 0 else x_np)
        pooled = np.zeros((B, C, n_out, n_out), dtype=x_np.dtype)
        for i in range(n_out):
            for j in range(n_out):
                pooled[:, :, i, j] = xp[:, :, i * s:i * s + k,
                                        j * s:j * s + k].max(axis=(2, 3))
        parts.append(pooled.reshape(B, -1))
    return np.concatenate(parts, axis=1)


if __name__ == "__main__":
    # Small shapes consistent with the module defaults: previous_conv_size=13,
    # out_pool_size=[6, 3, 2, 1]; batch=2, channels=4.
    key = jax.random.PRNGKey(0)
    B, C, H = 2, 4, 13
    x = jax.random.normal(key, (B, C, H, H), dtype=jnp.float32)

    fn = jax.jit(spatial_pyramid_pool)
    out = jax.block_until_ready(fn(x))

    # Expected feature length: C * (36 + 9 + 4 + 1) = 4 * 50 = 200
    assert out.shape == (B, C * (36 + 9 + 4 + 1)), out.shape

    ref = _reference_spp(np.asarray(x), (6, 3, 2, 1), H)
    np.testing.assert_allclose(np.asarray(out), ref, rtol=0, atol=0)

    print("KERNEL_OK")
</pallas_src>

<mosaic_0001>
module attributes {stable_mosaic.version = 11 : i64} {
  func.func @spp_kernel(%arg0: i32, %arg1: memref<13x13x8xf32, #tpu.memory_space<vmem>>, %arg2: memref<50x8xf32, #tpu.memory_space<vmem>>) attributes {dimension_semantics = [#tpu.dimension_semantics<parallel>], iteration_bounds = array<i64: 1>, scalar_prefetch = 0 : i64, scratch_operands = 0 : i64, tpu.core_type = #tpu.core_type<tc>, window_params = [{transform_indices = @transform_0, window_bounds = array<i64: 13, 13, 8>}, {transform_indices = @transform_1, window_bounds = array<i64: 50, 8>}]} {
    %c0 = arith.constant 0 : index
    %c0_0 = arith.constant 0 : index
    %c0_1 = arith.constant 0 : index
    %0 = vector.load %arg1[%c0, %c0_0, %c0_1] : memref<13x13x8xf32, #tpu.memory_space<vmem>>, vector<1x13x8xf32>
    %1 = vector.shape_cast %0 : vector<1x13x8xf32> to vector<13x8xf32>
    %c1 = arith.constant 1 : index
    %c0_2 = arith.constant 0 : index
    %c0_3 = arith.constant 0 : index
    %2 = vector.load %arg1[%c1, %c0_2, %c0_3] : memref<13x13x8xf32, #tpu.memory_space<vmem>>, vector<1x13x8xf32>
    %3 = vector.shape_cast %2 : vector<1x13x8xf32> to vector<13x8xf32>
    %4 = arith.maximumf %1, %3 : vector<13x8xf32>
    %c2 = arith.constant 2 : index
    %c0_4 = arith.constant 0 : index
    %c0_5 = arith.constant 0 : index
    %5 = vector.load %arg1[%c2, %c0_4, %c0_5] : memref<13x13x8xf32, #tpu.memory_space<vmem>>, vector<1x13x8xf32>
    %6 = vector.shape_cast %5 : vector<1x13x8xf32> to vector<13x8xf32>
    %7 = arith.maximumf %4, %6 : vector<13x8xf32>
    %8 = vector.extract_strided_slice %7 {offsets = [0, 0], sizes = [3, 8], strides = [1, 1]} : vector<13x8xf32> to vector<3x8xf32>
    %cst = arith.constant dense<0xFF800000> : vector<8xf32>
    %9 = vector.multi_reduction <maximumf>, %8, %cst [0] : vector<3x8xf32> to vector<8xf32>
    %10 = vector.shape_cast %9 : vector<8xf32> to vector<1x8xf32>
    %11 = vector.extract_strided_slice %7 {offsets = [2, 0], sizes = [3, 8], strides = [1, 1]} : vector<13x8xf32> to vector<3x8xf32>
    %cst_6 = arith.constant dense<0xFF800000> : vector<8xf32>
    %12 = vector.multi_reduction <maximumf>, %11, %cst_6 [0] : vector<3x8xf32> to vector<8xf32>
    %13 = vector.shape_cast %12 : vector<8xf32> to vector<1x8xf32>
    %14 = vector.extract_strided_slice %7 {offsets = [4, 0], sizes = [3, 8], strides = [1, 1]} : vector<13x8xf32> to vector<3x8xf32>
    %cst_7 = arith.constant dense<0xFF800000> : vector<8xf32>
    %15 = vector.multi_reduction <maximumf>, %14, %cst_7 [0] : vector<3x8xf32> to vector<8xf32>
    %16 = vector.shape_cast %15 : vector<8xf32> to vector<1x8xf32>
    %17 = vector.extract_strided_slice %7 {offsets = [6, 0], sizes = [3, 8], strides = [1, 1]} : vector<13x8xf32> to vector<3x8xf32>
    %cst_8 = arith.constant dense<0xFF800000> : vector<8xf32>
    %18 = vector.multi_reduction <maximumf>, %17, %cst_8 [0] : vector<3x8xf32> to vector<8xf32>
    %19 = vector.shape_cast %18 : vector<8xf32> to vector<1x8xf32>
    %20 = vector.extract_strided_slice %7 {offsets = [8, 0], sizes = [3, 8], strides = [1, 1]} : vector<13x8xf32> to vector<3x8xf32>
    %cst_9 = arith.constant dense<0xFF800000> : vector<8xf32>
    %21 = vector.multi_reduction <maximumf>, %20, %cst_9 [0] : vector<3x8xf32> to vector<8xf32>
    %22 = vector.shape_cast %21 : vector<8xf32> to vector<1x8xf32>
    %23 = vector.extract_strided_slice %7 {offsets = [10, 0], sizes = [3, 8], strides = [1, 1]} : vector<13x8xf32> to vector<3x8xf32>
    %cst_10 = arith.constant dense<0xFF800000> : vector<8xf32>
    %24 = vector.multi_reduction <maximumf>, %23, %cst_10 [0] : vector<3x8xf32> to vector<8xf32>
    %25 = vector.shape_cast %24 : vector<8xf32> to vector<1x8xf32>
    %26 = tpu.concatenate %10, %13, %16, %19, %22, %25 in 0 : vector<1x8xf32>, vector<1x8xf32>, vector<1x8xf32>, vector<1x8xf32>, vector<1x8xf32>, vector<1x8xf32> -> vector<6x8xf32>
    %c0_11 = arith.constant 0 : index
    %c0_12 = arith.constant 0 : index
    %27 = vector.load %arg2[%c0_11, %c0_12] : memref<50x8xf32, #tpu.memory_space<vmem>>, vector<6x8xf32>
    tpu.vector_store %arg2[%c0_11, %c0_12], %26 {strides = array<i32>} : memref<50x8xf32, #tpu.memory_space<vmem>>, vector<6x8xf32>,
    %c3 = arith.constant 3 : index
    %c0_13 = arith.constant 0 : index
    %c0_14 = arith.constant 0 : index
    %28 = vector.load %arg1[%c3, %c0_13, %c0_14] : memref<13x13x8xf32, #tpu.memory_space<vmem>>, vector<1x13x8xf32>
    %29 = vector.shape_cast %28 : vector<1x13x8xf32> to vector<13x8xf32>
    %30 = arith.maximumf %6, %29 : vector<13x8xf32>
    %c4 = arith.constant 4 : index
    %c0_15 = arith.constant 0 : index
    %c0_16 = arith.constant 0 : index
    %31 = vector.load %arg1[%c4, %c0_15, %c0_16] : memref<13x13x8xf32, #tpu.memory_space<vmem>>, vector<1x13x8xf32>
    %32 = vector.shape_cast %31 : vector<1x13x8xf32> to vector<13x8xf32>
    %33 = arith.maximumf %30, %32 : vector<13x8xf32>
    %34 = vector.extract_strided_slice %33 {offsets = [0, 0], sizes = [3, 8], strides = [1, 1]} : vector<13x8xf32> to vector<3x8xf32>
    %cst_17 = arith.constant dense<0xFF800000> : vector<8xf32>
    %35 = vector.multi_reduction <maximumf>, %34, %cst_17 [0] : vector<3x8xf32> to vector<8xf32>
    %36 = vector.shape_cast %35 : vector<8xf32> to vector<1x8xf32>
    %37 = vector.extract_strided_slice %33 {offsets = [2, 0], sizes = [3, 8], strides = [1, 1]} : vector<13x8xf32> to vector<3x8xf32>
    %cst_18 = arith.constant dense<0xFF800000> : vector<8xf32>
    %38 = vector.multi_reduction <maximumf>, %37, %cst_18 [0] : vector<3x8xf32> to vector<8xf32>
    %39 = vector.shape_cast %38 : vector<8xf32> to vector<1x8xf32>
    %40 = vector.extract_strided_slice %33 {offsets = [4, 0], sizes = [3, 8], strides = [1, 1]} : vector<13x8xf32> to vector<3x8xf32>
    %cst_19 = arith.constant dense<0xFF800000> : vector<8xf32>
    %41 = vector.multi_reduction <maximumf>, %40, %cst_19 [0] : vector<3x8xf32> to vector<8xf32>
    %42 = vector.shape_cast %41 : vector<8xf32> to vector<1x8xf32>
    %43 = vector.extract_strided_slice %33 {offsets = [6, 0], sizes = [3, 8], strides = [1, 1]} : vector<13x8xf32> to vector<3x8xf32>
    %cst_20 = arith.constant dense<0xFF800000> : vector<8xf32>
    %44 = vector.multi_reduction <maximumf>, %43, %cst_20 [0] : vector<3x8xf32> to vector<8xf32>
    %45 = vector.shape_cast %44 : vector<8xf32> to vector<1x8xf32>
    %46 = vector.extract_strided_slice %33 {offsets = [8, 0], sizes = [3, 8], strides = [1, 1]} : vector<13x8xf32> to vector<3x8xf32>
    %cst_21 = arith.constant dense<0xFF800000> : vector<8xf32>
    %47 = vector.multi_reduction <maximumf>, %46, %cst_21 [0] : vector<3x8xf32> to vector<8xf32>
    %48 = vector.shape_cast %47 : vector<8xf32> to vector<1x8xf32>
    %49 = vector.extract_strided_slice %33 {offsets = [10, 0], sizes = [3, 8], strides = [1, 1]} : vector<13x8xf32> to vector<3x8xf32>
    %cst_22 = arith.constant dense<0xFF800000> : vector<8xf32>
    %50 = vector.multi_reduction <maximumf>, %49, %cst_22 [0] : vector<3x8xf32> to vector<8xf32>
    %51 = vector.shape_cast %50 : vector<8xf32> to vector<1x8xf32>
    %52 = tpu.concatenate %36, %39, %42, %45, %48, %51 in 0 : vector<1x8xf32>, vector<1x8xf32>, vector<1x8xf32>, vector<1x8xf32>, vector<1x8xf32>, vector<1x8xf32> -> vector<6x8xf32>
    %c6 = arith.constant 6 : index
    %c0_23 = arith.constant 0 : index
    %53 = vector.load %arg2[%c6, %c0_23] : memref<50x8xf32, #tpu.memory_space<vmem>>, vector<6x8xf32>
    tpu.vector_store %arg2[%c6, %c0_23], %52 {strides = array<i32>} : memref<50x8xf32, #tpu.memory_space<vmem>>, vector<6x8xf32>,
    %c5 = arith.constant 5 : index
    %c0_24 = arith.constant 0 : index
    %c0_25 = arith.constant 0 : index
    %54 = vector.load %arg1[%c5, %c0_24, %c0_25] : memref<13x13x8xf32, #tpu.memory_space<vmem>>, vector<1x13x8xf32>
    %55 = vector.shape_cast %54 : vector<1x13x8xf32> to vector<13x8xf32>
    %56 = arith.maximumf %32, %55 : vector<13x8xf32>
    %c6_26 = arith.constant 6 : index
    %c0_27 = arith.constant 0 : index
    %c0_28 = arith.constant 0 : index
    %57 = vector.load %arg1[%c6_26, %c0_27, %c0_28] : memref<13x13x8xf32, #tpu.memory_space<vmem>>, vector<1x13x8xf32>
    %58 = vector.shape_cast %57 : vector<1x13x8xf32> to vector<13x8xf32>
    %59 = arith.maximumf %56, %58 : vector<13x8xf32>
    %60 = vector.extract_strided_slice %59 {offsets = [0, 0], sizes = [3, 8], strides = [1, 1]} : vector<13x8xf32> to vector<3x8xf32>
    %cst_29 = arith.constant dense<0xFF800000> : vector<8xf32>
    %61 = vector.multi_reduction <maximumf>, %60, %cst_29 [0] : vector<3x8xf32> to vector<8xf32>
    %62 = vector.shape_cast %61 : vector<8xf32> to vector<1x8xf32>
    %63 = vector.extract_strided_slice %59 {offsets = [2, 0], sizes = [3, 8], strides = [1, 1]} : vector<13x8xf32> to vector<3x8xf32>
    %cst_30 = arith.constant dense<0xFF800000> : vector<8xf32>
    %64 = vector.multi_reduction <maximumf>, %63, %cst_30 [0] : vector<3x8xf32> to vector<8xf32>
    %65 = vector.shape_cast %64 : vector<8xf32> to vector<1x8xf32>
    %66 = vector.extract_strided_slice %59 {offsets = [4, 0], sizes = [3, 8], strides = [1, 1]} : vector<13x8xf32> to vector<3x8xf32>
    %cst_31 = arith.constant dense<0xFF800000> : vector<8xf32>
    %67 = vector.multi_reduction <maximumf>, %66, %cst_31 [0] : vector<3x8xf32> to vector<8xf32>
    %68 = vector.shape_cast %67 : vector<8xf32> to vector<1x8xf32>
    %69 = vector.extract_strided_slice %59 {offsets = [6, 0], sizes = [3, 8], strides = [1, 1]} : vector<13x8xf32> to vector<3x8xf32>
    %cst_32 = arith.constant dense<0xFF800000> : vector<8xf32>
    %70 = vector.multi_reduction <maximumf>, %69, %cst_32 [0] : vector<3x8xf32> to vector<8xf32>
    %71 = vector.shape_cast %70 : vector<8xf32> to vector<1x8xf32>
    %72 = vector.extract_strided_slice %59 {offsets = [8, 0], sizes = [3, 8], strides = [1, 1]} : vector<13x8xf32> to vector<3x8xf32>
    %cst_33 = arith.constant dense<0xFF800000> : vector<8xf32>
    %73 = vector.multi_reduction <maximumf>, %72, %cst_33 [0] : vector<3x8xf32> to vector<8xf32>
    %74 = vector.shape_cast %73 : vector<8xf32> to vector<1x8xf32>
    %75 = vector.extract_strided_slice %59 {offsets = [10, 0], sizes = [3, 8], strides = [1, 1]} : vector<13x8xf32> to vector<3x8xf32>
    %cst_34 = arith.constant dense<0xFF800000> : vector<8xf32>
    %76 = vector.multi_reduction <maximumf>, %75, %cst_34 [0] : vector<3x8xf32> to vector<8xf32>
    %77 = vector.shape_cast %76 : vector<8xf32> to vector<1x8xf32>
    %78 = tpu.concatenate %62, %65, %68, %71, %74, %77 in 0 : vector<1x8xf32>, vector<1x8xf32>, vector<1x8xf32>, vector<1x8xf32>, vector<1x8xf32>, vector<1x8xf32> -> vector<6x8xf32>
    %c12 = arith.constant 12 : index
    %c0_35 = arith.constant 0 : index
    %79 = vector.load %arg2[%c12, %c0_35] : memref<50x8xf32, #tpu.memory_space<vmem>>, vector<6x8xf32>
    tpu.vector_store %arg2[%c12, %c0_35], %78 {strides = array<i32>} : memref<50x8xf32, #tpu.memory_space<vmem>>, vector<6x8xf32>,
    %c7 = arith.constant 7 : index
    %c0_36 = arith.constant 0 : index
    %c0_37 = arith.constant 0 : index
    %80 = vector.load %arg1[%c7, %c0_36, %c0_37] : memref<13x13x8xf32, #tpu.memory_space<vmem>>, vector<1x13x8xf32>
    %81 = vector.shape_cast %80 : vector<1x13x8xf32> to vector<13x8xf32>
    %82 = arith.maximumf %58, %81 : vector<13x8xf32>
    %c8 = arith.constant 8 : index
    %c0_38 = arith.constant 0 : index
    %c0_39 = arith.constant 0 : index
    %83 = vector.load %arg1[%c8, %c0_38, %c0_39] : memref<13x13x8xf32, #tpu.memory_space<vmem>>, vector<1x13x8xf32>
    %84 = vector.shape_cast %83 : vector<1x13x8xf32> to vector<13x8xf32>
    %85 = arith.maximumf %82, %84 : vector<13x8xf32>
    %86 = vector.extract_strided_slice %85 {offsets = [0, 0], sizes = [3, 8], strides = [1, 1]} : vector<13x8xf32> to vector<3x8xf32>
    %cst_40 = arith.constant dense<0xFF800000> : vector<8xf32>
    %87 = vector.multi_reduction <maximumf>, %86, %cst_40 [0] : vector<3x8xf32> to vector<8xf32>
    %88 = vector.shape_cast %87 : vector<8xf32> to vector<1x8xf32>
    %89 = vector.extract_strided_slice %85 {offsets = [2, 0], sizes = [3, 8], strides = [1, 1]} : vector<13x8xf32> to vector<3x8xf32>
    %cst_41 = arith.constant dense<0xFF800000> : vector<8xf32>
    %90 = vector.multi_reduction <maximumf>, %89, %cst_41 [0] : vector<3x8xf32> to vector<8xf32>
    %91 = vector.shape_cast %90 : vector<8xf32> to vector<1x8xf32>
    %92 = vector.extract_strided_slice %85 {offsets = [4, 0], sizes = [3, 8], strides = [1, 1]} : vector<13x8xf32> to vector<3x8xf32>
    %cst_42 = arith.constant dense<0xFF800000> : vector<8xf32>
    %93 = vector.multi_reduction <maximumf>, %92, %cst_42 [0] : vector<3x8xf32> to vector<8xf32>
    %94 = vector.shape_cast %93 : vector<8xf32> to vector<1x8xf32>
    %95 = vector.extract_strided_slice %85 {offsets = [6, 0], sizes = [3, 8], strides = [1, 1]} : vector<13x8xf32> to vector<3x8xf32>
    %cst_43 = arith.constant dense<0xFF800000> : vector<8xf32>
    %96 = vector.multi_reduction <maximumf>, %95, %cst_43 [0] : vector<3x8xf32> to vector<8xf32>
    %97 = vector.shape_cast %96 : vector<8xf32> to vector<1x8xf32>
    %98 = vector.extract_strided_slice %85 {offsets = [8, 0], sizes = [3, 8], strides = [1, 1]} : vector<13x8xf32> to vector<3x8xf32>
    %cst_44 = arith.constant dense<0xFF800000> : vector<8xf32>
    %99 = vector.multi_reduction <maximumf>, %98, %cst_44 [0] : vector<3x8xf32> to vector<8xf32>
    %100 = vector.shape_cast %99 : vector<8xf32> to vector<1x8xf32>
    %101 = vector.extract_strided_slice %85 {offsets = [10, 0], sizes = [3, 8], strides = [1, 1]} : vector<13x8xf32> to vector<3x8xf32>
    %cst_45 = arith.constant dense<0xFF800000> : vector<8xf32>
    %102 = vector.multi_reduction <maximumf>, %101, %cst_45 [0] : vector<3x8xf32> to vector<8xf32>
    %103 = vector.shape_cast %102 : vector<8xf32> to vector<1x8xf32>
    %104 = tpu.concatenate %88, %91, %94, %97, %100, %103 in 0 : vector<1x8xf32>, vector<1x8xf32>, vector<1x8xf32>, vector<1x8xf32>, vector<1x8xf32>, vector<1x8xf32> -> vector<6x8xf32>
    %c18 = arith.constant 18 : index
    %c0_46 = arith.constant 0 : index
    %105 = vector.load %arg2[%c18, %c0_46] : memref<50x8xf32, #tpu.memory_space<vmem>>, vector<6x8xf32>
    tpu.vector_store %arg2[%c18, %c0_46], %104 {strides = array<i32>} : memref<50x8xf32, #tpu.memory_space<vmem>>, vector<6x8xf32>,
    %c9 = arith.constant 9 : index
    %c0_47 = arith.constant 0 : index
    %c0_48 = arith.constant 0 : index
    %106 = vector.load %arg1[%c9, %c0_47, %c0_48] : memref<13x13x8xf32, #tpu.memory_space<vmem>>, vector<1x13x8xf32>
    %107 = vector.shape_cast %106 : vector<1x13x8xf32> to vector<13x8xf32>
    %108 = arith.maximumf %84, %107 : vector<13x8xf32>
    %c10 = arith.constant 10 : index
    %c0_49 = arith.constant 0 : index
    %c0_50 = arith.constant 0 : index
    %109 = vector.load %arg1[%c10, %c0_49, %c0_50] : memref<13x13x8xf32, #tpu.memory_space<vmem>>, vector<1x13x8xf32>
    %110 = vector.shape_cast %109 : vector<1x13x8xf32> to vector<13x8xf32>
    %111 = arith.maximumf %108, %110 : vector<13x8xf32>
    %112 = vector.extract_strided_slice %111 {offsets = [0, 0], sizes = [3, 8], strides = [1, 1]} : vector<13x8xf32> to vector<3x8xf32>
    %cst_51 = arith.constant dense<0xFF800000> : vector<8xf32>
    %113 = vector.multi_reduction <maximumf>, %112, %cst_51 [0] : vector<3x8xf32> to vector<8xf32>
    %114 = vector.shape_cast %113 : vector<8xf32> to vector<1x8xf32>
    %115 = vector.extract_strided_slice %111 {offsets = [2, 0], sizes = [3, 8], strides = [1, 1]} : vector<13x8xf32> to vector<3x8xf32>
    %cst_52 = arith.constant dense<0xFF800000> : vector<8xf32>
    %116 = vector.multi_reduction <maximumf>, %115, %cst_52 [0] : vector<3x8xf32> to vector<8xf32>
    %117 = vector.shape_cast %116 : vector<8xf32> to vector<1x8xf32>
    %118 = vector.extract_strided_slice %111 {offsets = [4, 0], sizes = [3, 8], strides = [1, 1]} : vector<13x8xf32> to vector<3x8xf32>
    %cst_53 = arith.constant dense<0xFF800000> : vector<8xf32>
    %119 = vector.multi_reduction <maximumf>, %118, %cst_53 [0] : vector<3x8xf32> to vector<8xf32>
    %120 = vector.shape_cast %119 : vector<8xf32> to vector<1x8xf32>
    %121 = vector.extract_strided_slice %111 {offsets = [6, 0], sizes = [3, 8], strides = [1, 1]} : vector<13x8xf32> to vector<3x8xf32>
    %cst_54 = arith.constant dense<0xFF800000> : vector<8xf32>
    %122 = vector.multi_reduction <maximumf>, %121, %cst_54 [0] : vector<3x8xf32> to vector<8xf32>
    %123 = vector.shape_cast %122 : vector<8xf32> to vector<1x8xf32>
    %124 = vector.extract_strided_slice %111 {offsets = [8, 0], sizes = [3, 8], strides = [1, 1]} : vector<13x8xf32> to vector<3x8xf32>
    %cst_55 = arith.constant dense<0xFF800000> : vector<8xf32>
    %125 = vector.multi_reduction <maximumf>, %124, %cst_55 [0] : vector<3x8xf32> to vector<8xf32>
    %126 = vector.shape_cast %125 : vector<8xf32> to vector<1x8xf32>
    %127 = vector.extract_strided_slice %111 {offsets = [10, 0], sizes = [3, 8], strides = [1, 1]} : vector<13x8xf32> to vector<3x8xf32>
    %cst_56 = arith.constant dense<0xFF800000> : vector<8xf32>
    %128 = vector.multi_reduction <maximumf>, %127, %cst_56 [0] : vector<3x8xf32> to vector<8xf32>
    %129 = vector.shape_cast %128 : vector<8xf32> to vector<1x8xf32>
    %130 = tpu.concatenate %114, %117, %120, %123, %126, %129 in 0 : vector<1x8xf32>, vector<1x8xf32>, vector<1x8xf32>, vector<1x8xf32>, vector<1x8xf32>, vector<1x8xf32> -> vector<6x8xf32>
    %c24 = arith.constant 24 : index
    %c0_57 = arith.constant 0 : index
    %131 = vector.load %arg2[%c24, %c0_57] : memref<50x8xf32, #tpu.memory_space<vmem>>, vector<6x8xf32>
    tpu.vector_store %arg2[%c24, %c0_57], %130 {strides = array<i32>} : memref<50x8xf32, #tpu.memory_space<vmem>>, vector<6x8xf32>,
    %c11 = arith.constant 11 : index
    %c0_58 = arith.constant 0 : index
    %c0_59 = arith.constant 0 : index
    %132 = vector.load %arg1[%c11, %c0_58, %c0_59] : memref<13x13x8xf32, #tpu.memory_space<vmem>>, vector<1x13x8xf32>
    %133 = vector.shape_cast %132 : vector<1x13x8xf32> to vector<13x8xf32>
    %134 = arith.maximumf %110, %133 : vector<13x8xf32>
    %c12_60 = arith.constant 12 : index
    %c0_61 = arith.constant 0 : index
    %c0_62 = arith.constant 0 : index
    %135 = vector.load %arg1[%c12_60, %c0_61, %c0_62] : memref<13x13x8xf32, #tpu.memory_space<vmem>>, vector<1x13x8xf32>
    %136 = vector.shape_cast %135 : vector<1x13x8xf32> to vector<13x8xf32>
    %137 = arith.maximumf %134, %136 : vector<13x8xf32>
    %138 = vector.extract_strided_slice %137 {offsets = [0, 0], sizes = [3, 8], strides = [1, 1]} : vector<13x8xf32> to vector<3x8xf32>
    %cst_63 = arith.constant dense<0xFF800000> : vector<8xf32>
    %139 = vector.multi_reduction <maximumf>, %138, %cst_63 [0] : vector<3x8xf32> to vector<8xf32>
    %140 = vector.shape_cast %139 : vector<8xf32> to vector<1x8xf32>
    %141 = vector.extract_strided_slice %137 {offsets = [2, 0], sizes = [3, 8], strides = [1, 1]} : vector<13x8xf32> to vector<3x8xf32>
    %cst_64 = arith.constant dense<0xFF800000> : vector<8xf32>
    %142 = vector.multi_reduction <maximumf>, %141, %cst_64 [0] : vector<3x8xf32> to vector<8xf32>
    %143 = vector.shape_cast %142 : vector<8xf32> to vector<1x8xf32>
    %144 = vector.extract_strided_slice %137 {offsets = [4, 0], sizes = [3, 8], strides = [1, 1]} : vector<13x8xf32> to vector<3x8xf32>
    %cst_65 = arith.constant dense<0xFF800000> : vector<8xf32>
    %145 = vector.multi_reduction <maximumf>, %144, %cst_65 [0] : vector<3x8xf32> to vector<8xf32>
    %146 = vector.shape_cast %145 : vector<8xf32> to vector<1x8xf32>
    %147 = vector.extract_strided_slice %137 {offsets = [6, 0], sizes = [3, 8], strides = [1, 1]} : vector<13x8xf32> to vector<3x8xf32>
    %cst_66 = arith.constant dense<0xFF800000> : vector<8xf32>
    %148 = vector.multi_reduction <maximumf>, %147, %cst_66 [0] : vector<3x8xf32> to vector<8xf32>
    %149 = vector.shape_cast %148 : vector<8xf32> to vector<1x8xf32>
    %150 = vector.extract_strided_slice %137 {offsets = [8, 0], sizes = [3, 8], strides = [1, 1]} : vector<13x8xf32> to vector<3x8xf32>
    %cst_67 = arith.constant dense<0xFF800000> : vector<8xf32>
    %151 = vector.multi_reduction <maximumf>, %150, %cst_67 [0] : vector<3x8xf32> to vector<8xf32>
    %152 = vector.shape_cast %151 : vector<8xf32> to vector<1x8xf32>
    %153 = vector.extract_strided_slice %137 {offsets = [10, 0], sizes = [3, 8], strides = [1, 1]} : vector<13x8xf32> to vector<3x8xf32>
    %cst_68 = arith.constant dense<0xFF800000> : vector<8xf32>
    %154 = vector.multi_reduction <maximumf>, %153, %cst_68 [0] : vector<3x8xf32> to vector<8xf32>
    %155 = vector.shape_cast %154 : vector<8xf32> to vector<1x8xf32>
    %156 = tpu.concatenate %140, %143, %146, %149, %152, %155 in 0 : vector<1x8xf32>, vector<1x8xf32>, vector<1x8xf32>, vector<1x8xf32>, vector<1x8xf32>, vector<1x8xf32> -> vector<6x8xf32>
    %c30 = arith.constant 30 : index
    %c0_69 = arith.constant 0 : index
    %157 = vector.load %arg2[%c30, %c0_69] : memref<50x8xf32, #tpu.memory_space<vmem>>, vector<6x8xf32>
    tpu.vector_store %arg2[%c30, %c0_69], %156 {strides = array<i32>} : memref<50x8xf32, #tpu.memory_space<vmem>>, vector<6x8xf32>,
    %c0_70 = arith.constant 0 : index
    %c0_71 = arith.constant 0 : index
    %c0_72 = arith.constant 0 : index
    %158 = vector.load %arg1[%c0_70, %c0_71, %c0_72] : memref<13x13x8xf32, #tpu.memory_space<vmem>>, vector<1x13x8xf32>
    %159 = vector.shape_cast %158 : vector<1x13x8xf32> to vector<13x8xf32>
    %c1_73 = arith.constant 1 : index
    %c0_74 = arith.constant 0 : index
    %c0_75 = arith.constant 0 : index
    %160 = vector.load %arg1[%c1_73, %c0_74, %c0_75] : memref<13x13x8xf32, #tpu.memory_space<vmem>>, vector<1x13x8xf32>
    %161 = vector.shape_cast %160 : vector<1x13x8xf32> to vector<13x8xf32>
    %162 = arith.maximumf %159, %161 : vector<13x8xf32>
    %c2_76 = arith.constant 2 : index
    %c0_77 = arith.constant 0 : index
    %c0_78 = arith.constant 0 : index
    %163 = vector.load %arg1[%c2_76, %c0_77, %c0_78] : memref<13x13x8xf32, #tpu.memory_space<vmem>>, vector<1x13x8xf32>
    %164 = vector.shape_cast %163 : vector<1x13x8xf32> to vector<13x8xf32>
    %165 = arith.maximumf %162, %164 : vector<13x8xf32>
    %c3_79 = arith.constant 3 : index
    %c0_80 = arith.constant 0 : index
    %c0_81 = arith.constant 0 : index
    %166 = vector.load %arg1[%c3_79, %c0_80, %c0_81] : memref<13x13x8xf32, #tpu.memory_space<vmem>>, vector<1x13x8xf32>
    %167 = vector.shape_cast %166 : vector<1x13x8xf32> to vector<13x8xf32>
    %168 = arith.maximumf %165, %167 : vector<13x8xf32>
    %c4_82 = arith.constant 4 : index
    %c0_83 = arith.constant 0 : index
    %c0_84 = arith.constant 0 : index
    %169 = vector.load %arg1[%c4_82, %c0_83, %c0_84] : memref<13x13x8xf32, #tpu.memory_space<vmem>>, vector<1x13x8xf32>
    %170 = vector.shape_cast %169 : vector<1x13x8xf32> to vector<13x8xf32>
    %171 = arith.maximumf %168, %170 : vector<13x8xf32>
    %172 = vector.extract_strided_slice %171 {offsets = [0, 0], sizes = [5, 8], strides = [1, 1]} : vector<13x8xf32> to vector<5x8xf32>
    %cst_85 = arith.constant dense<0xFF800000> : vector<8xf32>
    %173 = vector.multi_reduction <maximumf>, %172, %cst_85 [0] : vector<5x8xf32> to vector<8xf32>
    %174 = vector.shape_cast %173 : vector<8xf32> to vector<1x8xf32>
    %175 = vector.extract_strided_slice %171 {offsets = [4, 0], sizes = [5, 8], strides = [1, 1]} : vector<13x8xf32> to vector<5x8xf32>
    %cst_86 = arith.constant dense<0xFF800000> : vector<8xf32>
    %176 = vector.multi_reduction <maximumf>, %175, %cst_86 [0] : vector<5x8xf32> to vector<8xf32>
    %177 = vector.shape_cast %176 : vector<8xf32> to vector<1x8xf32>
    %178 = vector.extract_strided_slice %171 {offsets = [8, 0], sizes = [5, 8], strides = [1, 1]} : vector<13x8xf32> to vector<5x8xf32>
    %cst_87 = arith.constant dense<0xFF800000> : vector<8xf32>
    %179 = vector.multi_reduction <maximumf>, %178, %cst_87 [0] : vector<5x8xf32> to vector<8xf32>
    %180 = vector.shape_cast %179 : vector<8xf32> to vector<1x8xf32>
    %181 = tpu.concatenate %174, %177, %180 in 0 : vector<1x8xf32>, vector<1x8xf32>, vector<1x8xf32> -> vector<3x8xf32>
    %c36 = arith.constant 36 : index
    %c0_88 = arith.constant 0 : index
    %182 = vector.load %arg2[%c36, %c0_88] : memref<50x8xf32, #tpu.memory_space<vmem>>, vector<3x8xf32>
    tpu.vector_store %arg2[%c36, %c0_88], %181 {strides = array<i32>} : memref<50x8xf32, #tpu.memory_space<vmem>>, vector<3x8xf32>,
    %c5_89 = arith.constant 5 : index
    %c0_90 = arith.constant 0 : index
    %c0_91 = arith.constant 0 : index
    %183 = vector.load %arg1[%c5_89, %c0_90, %c0_91] : memref<13x13x8xf32, #tpu.memory_space<vmem>>, vector<1x13x8xf32>
    %184 = vector.shape_cast %183 : vector<1x13x8xf32> to vector<13x8xf32>
    %185 = arith.maximumf %170, %184 : vector<13x8xf32>
    %c6_92 = arith.constant 6 : index
    %c0_93 = arith.constant 0 : index
    %c0_94 = arith.constant 0 : index
    %186 = vector.load %arg1[%c6_92, %c0_93, %c0_94] : memref<13x13x8xf32, #tpu.memory_space<vmem>>, vector<1x13x8xf32>
    %187 = vector.shape_cast %186 : vector<1x13x8xf32> to vector<13x8xf32>
    %188 = arith.maximumf %185, %187 : vector<13x8xf32>
    %c7_95 = arith.constant 7 : index
    %c0_96 = arith.constant 0 : index
    %c0_97 = arith.constant 0 : index
    %189 = vector.load %arg1[%c7_95, %c0_96, %c0_97] : memref<13x13x8xf32, #tpu.memory_space<vmem>>, vector<1x13x8xf32>
    %190 = vector.shape_cast %189 : vector<1x13x8xf32> to vector<13x8xf32>
    %191 = arith.maximumf %188, %190 : vector<13x8xf32>
    %c8_98 = arith.constant 8 : index
    %c0_99 = arith.constant 0 : index
    %c0_100 = arith.constant 0 : index
    %192 = vector.load %arg1[%c8_98, %c0_99, %c0_100] : memref<13x13x8xf32, #tpu.memory_space<vmem>>, vector<1x13x8xf32>
    %193 = vector.shape_cast %192 : vector<1x13x8xf32> to vector<13x8xf32>
    %194 = arith.maximumf %191, %193 : vector<13x8xf32>
    %195 = vector.extract_strided_slice %194 {offsets = [0, 0], sizes = [5, 8], strides = [1, 1]} : vector<13x8xf32> to vector<5x8xf32>
    %cst_101 = arith.constant dense<0xFF800000> : vector<8xf32>
    %196 = vector.multi_reduction <maximumf>, %195, %cst_101 [0] : vector<5x8xf32> to vector<8xf32>
    %197 = vector.shape_cast %196 : vector<8xf32> to vector<1x8xf32>
    %198 = vector.extract_strided_slice %194 {offsets = [4, 0], sizes = [5, 8], strides = [1, 1]} : vector<13x8xf32> to vector<5x8xf32>
    %cst_102 = arith.constant dense<0xFF800000> : vector<8xf32>
    %199 = vector.multi_reduction <maximumf>, %198, %cst_102 [0] : vector<5x8xf32> to vector<8xf32>
    %200 = vector.shape_cast %199 : vector<8xf32> to vector<1x8xf32>
    %201 = vector.extract_strided_slice %194 {offsets = [8, 0], sizes = [5, 8], strides = [1, 1]} : vector<13x8xf32> to vector<5x8xf32>
    %cst_103 = arith.constant dense<0xFF800000> : vector<8xf32>
    %202 = vector.multi_reduction <maximumf>, %201, %cst_103 [0] : vector<5x8xf32> to vector<8xf32>
    %203 = vector.shape_cast %202 : vector<8xf32> to vector<1x8xf32>
    %204 = tpu.concatenate %197, %200, %203 in 0 : vector<1x8xf32>, vector<1x8xf32>, vector<1x8xf32> -> vector<3x8xf32>
    %c39 = arith.constant 39 : index
    %c0_104 = arith.constant 0 : index
    %205 = vector.load %arg2[%c39, %c0_104] : memref<50x8xf32, #tpu.memory_space<vmem>>, vector<3x8xf32>
    tpu.vector_store %arg2[%c39, %c0_104], %204 {strides = array<i32>} : memref<50x8xf32, #tpu.memory_space<vmem>>, vector<3x8xf32>,
    %c9_105 = arith.constant 9 : index
    %c0_106 = arith.constant 0 : index
    %c0_107 = arith.constant 0 : index
    %206 = vector.load %arg1[%c9_105, %c0_106, %c0_107] : memref<13x13x8xf32, #tpu.memory_space<vmem>>, vector<1x13x8xf32>
    %207 = vector.shape_cast %206 : vector<1x13x8xf32> to vector<13x8xf32>
    %208 = arith.maximumf %193, %207 : vector<13x8xf32>
    %c10_108 = arith.constant 10 : index
    %c0_109 = arith.constant 0 : index
    %c0_110 = arith.constant 0 : index
    %209 = vector.load %arg1[%c10_108, %c0_109, %c0_110] : memref<13x13x8xf32, #tpu.memory_space<vmem>>, vector<1x13x8xf32>
    %210 = vector.shape_cast %209 : vector<1x13x8xf32> to vector<13x8xf32>
    %211 = arith.maximumf %208, %210 : vector<13x8xf32>
    %c11_111 = arith.constant 11 : index
    %c0_112 = arith.constant 0 : index
    %c0_113 = arith.constant 0 : index
    %212 = vector.load %arg1[%c11_111, %c0_112, %c0_113] : memref<13x13x8xf32, #tpu.memory_space<vmem>>, vector<1x13x8xf32>
    %213 = vector.shape_cast %212 : vector<1x13x8xf32> to vector<13x8xf32>
    %214 = arith.maximumf %211, %213 : vector<13x8xf32>
    %c12_114 = arith.constant 12 : index
    %c0_115 = arith.constant 0 : index
    %c0_116 = arith.constant 0 : index
    %215 = vector.load %arg1[%c12_114, %c0_115, %c0_116] : memref<13x13x8xf32, #tpu.memory_space<vmem>>, vector<1x13x8xf32>
    %216 = vector.shape_cast %215 : vector<1x13x8xf32> to vector<13x8xf32>
    %217 = arith.maximumf %214, %216 : vector<13x8xf32>
    %218 = vector.extract_strided_slice %217 {offsets = [0, 0], sizes = [5, 8], strides = [1, 1]} : vector<13x8xf32> to vector<5x8xf32>
    %cst_117 = arith.constant dense<0xFF800000> : vector<8xf32>
    %219 = vector.multi_reduction <maximumf>, %218, %cst_117 [0] : vector<5x8xf32> to vector<8xf32>
    %220 = vector.shape_cast %219 : vector<8xf32> to vector<1x8xf32>
    %221 = vector.extract_strided_slice %217 {offsets = [4, 0], sizes = [5, 8], strides = [1, 1]} : vector<13x8xf32> to vector<5x8xf32>
    %cst_118 = arith.constant dense<0xFF800000> : vector<8xf32>
    %222 = vector.multi_reduction <maximumf>, %221, %cst_118 [0] : vector<5x8xf32> to vector<8xf32>
    %223 = vector.shape_cast %222 : vector<8xf32> to vector<1x8xf32>
    %224 = vector.extract_strided_slice %217 {offsets = [8, 0], sizes = [5, 8], strides = [1, 1]} : vector<13x8xf32> to vector<5x8xf32>
    %cst_119 = arith.constant dense<0xFF800000> : vector<8xf32>
    %225 = vector.multi_reduction <maximumf>, %224, %cst_119 [0] : vector<5x8xf32> to vector<8xf32>
    %226 = vector.shape_cast %225 : vector<8xf32> to vector<1x8xf32>
    %227 = tpu.concatenate %220, %223, %226 in 0 : vector<1x8xf32>, vector<1x8xf32>, vector<1x8xf32> -> vector<3x8xf32>
    %c42 = arith.constant 42 : index
    %c0_120 = arith.constant 0 : index
    %228 = vector.load %arg2[%c42, %c0_120] : memref<50x8xf32, #tpu.memory_space<vmem>>, vector<3x8xf32>
    tpu.vector_store %arg2[%c42, %c0_120], %227 {strides = array<i32>} : memref<50x8xf32, #tpu.memory_space<vmem>>, vector<3x8xf32>,
    %c0_121 = arith.constant 0 : index
    %c0_122 = arith.constant 0 : index
    %c0_123 = arith.constant 0 : index
    %229 = vector.load %arg1[%c0_121, %c0_122, %c0_123] : memref<13x13x8xf32, #tpu.memory_space<vmem>>, vector<1x13x8xf32>
    %230 = vector.shape_cast %229 : vector<1x13x8xf32> to vector<13x8xf32>
    %c1_124 = arith.constant 1 : index
    %c0_125 = arith.constant 0 : index
    %c0_126 = arith.constant 0 : index
    %231 = vector.load %arg1[%c1_124, %c0_125, %c0_126] : memref<13x13x8xf32, #tpu.memory_space<vmem>>, vector<1x13x8xf32>
    %232 = vector.shape_cast %231 : vector<1x13x8xf32> to vector<13x8xf32>
    %233 = arith.maximumf %230, %232 : vector<13x8xf32>
    %c2_127 = arith.constant 2 : index
    %c0_128 = arith.constant 0 : index
    %c0_129 = arith.constant 0 : index
    %234 = vector.load %arg1[%c2_127, %c0_128, %c0_129] : memref<13x13x8xf32, #tpu.memory_space<vmem>>, vector<1x13x8xf32>
    %235 = vector.shape_cast %234 : vector<1x13x8xf32> to vector<13x8xf32>
    %236 = arith.maximumf %233, %235 : vector<13x8xf32>
    %c3_130 = arith.constant 3 : index
    %c0_131 = arith.constant 0 : index
    %c0_132 = arith.constant 0 : index
    %237 = vector.load %arg1[%c3_130, %c0_131, %c0_132] : memref<13x13x8xf32, #tpu.memory_space<vmem>>, vector<1x13x8xf32>
    %238 = vector.shape_cast %237 : vector<1x13x8xf32> to vector<13x8xf32>
    %239 = arith.maximumf %236, %238 : vector<13x8xf32>
    %c4_133 = arith.constant 4 : index
    %c0_134 = arith.constant 0 : index
    %c0_135 = arith.constant 0 : index
    %240 = vector.load %arg1[%c4_133, %c0_134, %c0_135] : memref<13x13x8xf32, #tpu.memory_space<vmem>>, vector<1x13x8xf32>
    %241 = vector.shape_cast %240 : vector<1x13x8xf32> to vector<13x8xf32>
    %242 = arith.maximumf %239, %241 : vector<13x8xf32>
    %c5_136 = arith.constant 5 : index
    %c0_137 = arith.constant 0 : index
    %c0_138 = arith.constant 0 : index
    %243 = vector.load %arg1[%c5_136, %c0_137, %c0_138] : memref<13x13x8xf32, #tpu.memory_space<vmem>>, vector<1x13x8xf32>
    %244 = vector.shape_cast %243 : vector<1x13x8xf32> to vector<13x8xf32>
    %245 = arith.maximumf %242, %244 : vector<13x8xf32>
    %c6_139 = arith.constant 6 : index
    %c0_140 = arith.constant 0 : index
    %c0_141 = arith.constant 0 : index
    %246 = vector.load %arg1[%c6_139, %c0_140, %c0_141] : memref<13x13x8xf32, #tpu.memory_space<vmem>>, vector<1x13x8xf32>
    %247 = vector.shape_cast %246 : vector<1x13x8xf32> to vector<13x8xf32>
    %248 = arith.maximumf %245, %247 : vector<13x8xf32>
    %249 = vector.extract_strided_slice %248 {offsets = [0, 0], sizes = [7, 8], strides = [1, 1]} : vector<13x8xf32> to vector<7x8xf32>
    %cst_142 = arith.constant dense<0xFF800000> : vector<8xf32>
    %250 = vector.multi_reduction <maximumf>, %249, %cst_142 [0] : vector<7x8xf32> to vector<8xf32>
    %251 = vector.shape_cast %250 : vector<8xf32> to vector<1x8xf32>
    %252 = vector.extract_strided_slice %248 {offsets = [6, 0], sizes = [7, 8], strides = [1, 1]} : vector<13x8xf32> to vector<7x8xf32>
    %cst_143 = arith.constant dense<0xFF800000> : vector<8xf32>
    %253 = vector.multi_reduction <maximumf>, %252, %cst_143 [0] : vector<7x8xf32> to vector<8xf32>
    %254 = vector.shape_cast %253 : vector<8xf32> to vector<1x8xf32>
    %255 = tpu.concatenate %251, %254 in 0 : vector<1x8xf32>, vector<1x8xf32> -> vector<2x8xf32>
    %c45 = arith.constant 45 : index
    %c0_144 = arith.constant 0 : index
    %256 = vector.load %arg2[%c45, %c0_144] : memref<50x8xf32, #tpu.memory_space<vmem>>, vector<2x8xf32>
    tpu.vector_store %arg2[%c45, %c0_144], %255 {strides = array<i32>} : memref<50x8xf32, #tpu.memory_space<vmem>>, vector<2x8xf32>,
    %c7_145 = arith.constant 7 : index
    %c0_146 = arith.constant 0 : index
    %c0_147 = arith.constant 0 : index
    %257 = vector.load %arg1[%c7_145, %c0_146, %c0_147] : memref<13x13x8xf32, #tpu.memory_space<vmem>>, vector<1x13x8xf32>
    %258 = vector.shape_cast %257 : vector<1x13x8xf32> to vector<13x8xf32>
    %259 = arith.maximumf %247, %258 : vector<13x8xf32>
    %c8_148 = arith.constant 8 : index
    %c0_149 = arith.constant 0 : index
    %c0_150 = arith.constant 0 : index
    %260 = vector.load %arg1[%c8_148, %c0_149, %c0_150] : memref<13x13x8xf32, #tpu.memory_space<vmem>>, vector<1x13x8xf32>
    %261 = vector.shape_cast %260 : vector<1x13x8xf32> to vector<13x8xf32>
    %262 = arith.maximumf %259, %261 : vector<13x8xf32>
    %c9_151 = arith.constant 9 : index
    %c0_152 = arith.constant 0 : index
    %c0_153 = arith.constant 0 : index
    %263 = vector.load %arg1[%c9_151, %c0_152, %c0_153] : memref<13x13x8xf32, #tpu.memory_space<vmem>>, vector<1x13x8xf32>
    %264 = vector.shape_cast %263 : vector<1x13x8xf32> to vector<13x8xf32>
    %265 = arith.maximumf %262, %264 : vector<13x8xf32>
    %c10_154 = arith.constant 10 : index
    %c0_155 = arith.constant 0 : index
    %c0_156 = arith.constant 0 : index
    %266 = vector.load %arg1[%c10_154, %c0_155, %c0_156] : memref<13x13x8xf32, #tpu.memory_space<vmem>>, vector<1x13x8xf32>
    %267 = vector.shape_cast %266 : vector<1x13x8xf32> to vector<13x8xf32>
    %268 = arith.maximumf %265, %267 : vector<13x8xf32>
    %c11_157 = arith.constant 11 : index
    %c0_158 = arith.constant 0 : index
    %c0_159 = arith.constant 0 : index
    %269 = vector.load %arg1[%c11_157, %c0_158, %c0_159] : memref<13x13x8xf32, #tpu.memory_space<vmem>>, vector<1x13x8xf32>
    %270 = vector.shape_cast %269 : vector<1x13x8xf32> to vector<13x8xf32>
    %271 = arith.maximumf %268, %270 : vector<13x8xf32>
    %c12_160 = arith.constant 12 : index
    %c0_161 = arith.constant 0 : index
    %c0_162 = arith.constant 0 : index
    %272 = vector.load %arg1[%c12_160, %c0_161, %c0_162] : memref<13x13x8xf32, #tpu.memory_space<vmem>>, vector<1x13x8xf32>
    %273 = vector.shape_cast %272 : vector<1x13x8xf32> to vector<13x8xf32>
    %274 = arith.maximumf %271, %273 : vector<13x8xf32>
    %275 = vector.extract_strided_slice %274 {offsets = [0, 0], sizes = [7, 8], strides = [1, 1]} : vector<13x8xf32> to vector<7x8xf32>
    %cst_163 = arith.constant dense<0xFF800000> : vector<8xf32>
    %276 = vector.multi_reduction <maximumf>, %275, %cst_163 [0] : vector<7x8xf32> to vector<8xf32>
    %277 = vector.shape_cast %276 : vector<8xf32> to vector<1x8xf32>
    %278 = vector.extract_strided_slice %274 {offsets = [6, 0], sizes = [7, 8], strides = [1, 1]} : vector<13x8xf32> to vector<7x8xf32>
    %cst_164 = arith.constant dense<0xFF800000> : vector<8xf32>
    %279 = vector.multi_reduction <maximumf>, %278, %cst_164 [0] : vector<7x8xf32> to vector<8xf32>
    %280 = vector.shape_cast %279 : vector<8xf32> to vector<1x8xf32>
    %281 = tpu.concatenate %277, %280 in 0 : vector<1x8xf32>, vector<1x8xf32> -> vector<2x8xf32>
    %c47 = arith.constant 47 : index
    %c0_165 = arith.constant 0 : index
    %282 = vector.load %arg2[%c47, %c0_165] : memref<50x8xf32, #tpu.memory_space<vmem>>, vector<2x8xf32>
    tpu.vector_store %arg2[%c47, %c0_165], %281 {strides = array<i32>} : memref<50x8xf32, #tpu.memory_space<vmem>>, vector<2x8xf32>,
    %c0_166 = arith.constant 0 : index
    %c0_167 = arith.constant 0 : index
    %c0_168 = arith.constant 0 : index
    %283 = vector.load %arg1[%c0_166, %c0_167, %c0_168] : memref<13x13x8xf32, #tpu.memory_space<vmem>>, vector<1x13x8xf32>
    %284 = vector.shape_cast %283 : vector<1x13x8xf32> to vector<13x8xf32>
    %c1_169 = arith.constant 1 : index
    %c0_170 = arith.constant 0 : index
    %c0_171 = arith.constant 0 : index
    %285 = vector.load %arg1[%c1_169, %c0_170, %c0_171] : memref<13x13x8xf32, #tpu.memory_space<vmem>>, vector<1x13x8xf32>
    %286 = vector.shape_cast %285 : vector<1x13x8xf32> to vector<13x8xf32>
    %287 = arith.maximumf %284, %286 : vector<13x8xf32>
    %c2_172 = arith.constant 2 : index
    %c0_173 = arith.constant 0 : index
    %c0_174 = arith.constant 0 : index
    %288 = vector.load %arg1[%c2_172, %c0_173, %c0_174] : memref<13x13x8xf32, #tpu.memory_space<vmem>>, vector<1x13x8xf32>
    %289 = vector.shape_cast %288 : vector<1x13x8xf32> to vector<13x8xf32>
    %290 = arith.maximumf %287, %289 : vector<13x8xf32>
    %c3_175 = arith.constant 3 : index
    %c0_176 = arith.constant 0 : index
    %c0_177 = arith.constant 0 : index
    %291 = vector.load %arg1[%c3_175, %c0_176, %c0_177] : memref<13x13x8xf32, #tpu.memory_space<vmem>>, vector<1x13x8xf32>
    %292 = vector.shape_cast %291 : vector<1x13x8xf32> to vector<13x8xf32>
    %293 = arith.maximumf %290, %292 : vector<13x8xf32>
    %c4_178 = arith.constant 4 : index
    %c0_179 = arith.constant 0 : index
    %c0_180 = arith.constant 0 : index
    %294 = vector.load %arg1[%c4_178, %c0_179, %c0_180] : memref<13x13x8xf32, #tpu.memory_space<vmem>>, vector<1x13x8xf32>
    %295 = vector.shape_cast %294 : vector<1x13x8xf32> to vector<13x8xf32>
    %296 = arith.maximumf %293, %295 : vector<13x8xf32>
    %c5_181 = arith.constant 5 : index
    %c0_182 = arith.constant 0 : index
    %c0_183 = arith.constant 0 : index
    %297 = vector.load %arg1[%c5_181, %c0_182, %c0_183] : memref<13x13x8xf32, #tpu.memory_space<vmem>>, vector<1x13x8xf32>
    %298 = vector.shape_cast %297 : vector<1x13x8xf32> to vector<13x8xf32>
    %299 = arith.maximumf %296, %298 : vector<13x8xf32>
    %c6_184 = arith.constant 6 : index
    %c0_185 = arith.constant 0 : index
    %c0_186 = arith.constant 0 : index
    %300 = vector.load %arg1[%c6_184, %c0_185, %c0_186] : memref<13x13x8xf32, #tpu.memory_space<vmem>>, vector<1x13x8xf32>
    %301 = vector.shape_cast %300 : vector<1x13x8xf32> to vector<13x8xf32>
    %302 = arith.maximumf %299, %301 : vector<13x8xf32>
    %c7_187 = arith.constant 7 : index
    %c0_188 = arith.constant 0 : index
    %c0_189 = arith.constant 0 : index
    %303 = vector.load %arg1[%c7_187, %c0_188, %c0_189] : memref<13x13x8xf32, #tpu.memory_space<vmem>>, vector<1x13x8xf32>
    %304 = vector.shape_cast %303 : vector<1x13x8xf32> to vector<13x8xf32>
    %305 = arith.maximumf %302, %304 : vector<13x8xf32>
    %c8_190 = arith.constant 8 : index
    %c0_191 = arith.constant 0 : index
    %c0_192 = arith.constant 0 : index
    %306 = vector.load %arg1[%c8_190, %c0_191, %c0_192] : memref<13x13x8xf32, #tpu.memory_space<vmem>>, vector<1x13x8xf32>
    %307 = vector.shape_cast %306 : vector<1x13x8xf32> to vector<13x8xf32>
    %308 = arith.maximumf %305, %307 : vector<13x8xf32>
    %c9_193 = arith.constant 9 : index
    %c0_194 = arith.constant 0 : index
    %c0_195 = arith.constant 0 : index
    %309 = vector.load %arg1[%c9_193, %c0_194, %c0_195] : memref<13x13x8xf32, #tpu.memory_space<vmem>>, vector<1x13x8xf32>
    %310 = vector.shape_cast %309 : vector<1x13x8xf32> to vector<13x8xf32>
    %311 = arith.maximumf %308, %310 : vector<13x8xf32>
    %c10_196 = arith.constant 10 : index
    %c0_197 = arith.constant 0 : index
    %c0_198 = arith.constant 0 : index
    %312 = vector.load %arg1[%c10_196, %c0_197, %c0_198] : memref<13x13x8xf32, #tpu.memory_space<vmem>>, vector<1x13x8xf32>
    %313 = vector.shape_cast %312 : vector<1x13x8xf32> to vector<13x8xf32>
    %314 = arith.maximumf %311, %313 : vector<13x8xf32>
    %c11_199 = arith.constant 11 : index
    %c0_200 = arith.constant 0 : index
    %c0_201 = arith.constant 0 : index
    %315 = vector.load %arg1[%c11_199, %c0_200, %c0_201] : memref<13x13x8xf32, #tpu.memory_space<vmem>>, vector<1x13x8xf32>
    %316 = vector.shape_cast %315 : vector<1x13x8xf32> to vector<13x8xf32>
    %317 = arith.maximumf %314, %316 : vector<13x8xf32>
    %c12_202 = arith.constant 12 : index
    %c0_203 = arith.constant 0 : index
    %c0_204 = arith.constant 0 : index
    %318 = vector.load %arg1[%c12_202, %c0_203, %c0_204] : memref<13x13x8xf32, #tpu.memory_space<vmem>>, vector<1x13x8xf32>
    %319 = vector.shape_cast %318 : vector<1x13x8xf32> to vector<13x8xf32>
    %320 = arith.maximumf %317, %319 : vector<13x8xf32>
    %cst_205 = arith.constant dense<0xFF800000> : vector<8xf32>
    %321 = vector.multi_reduction <maximumf>, %320, %cst_205 [0] : vector<13x8xf32> to vector<8xf32>
    %322 = vector.shape_cast %321 : vector<8xf32> to vector<1x8xf32>
    %c49 = arith.constant 49 : index
    %c0_206 = arith.constant 0 : index
    %323 = vector.load %arg2[%c49, %c0_206] : memref<50x8xf32, #tpu.memory_space<vmem>>, vector<1x8xf32>
    tpu.vector_store %arg2[%c49, %c0_206], %322 {strides = array<i32>} : memref<50x8xf32, #tpu.memory_space<vmem>>, vector<1x8xf32>,
    return
  }
  func.func @transform_0(%arg0: i32) -> (i32, i32, i32) {
    %c0_i32 = arith.constant 0 : i32
    %c0_i32_0 = arith.constant 0 : i32
    %c0_i32_1 = arith.constant 0 : i32
    return %c0_i32, %c0_i32_0, %arg0 : i32, i32, i32
  }
  func.func @transform_1(%arg0: i32) -> (i32, i32) {
    %c0_i32 = arith.constant 0 : i32
    %c0_i32_0 = arith.constant 0 : i32
    return %c0_i32, %arg0 : i32, i32
  }
}

</mosaic_0001>

<bundles_post_ra>
// kernel: spatial_pyramid_pool.1
= control target key start
LH: loop header
LB: loop body
LE: loop exit
PB: predicated region body
PF: predicated region fallthrough
CT: control target
= control target key end

     0   :  { %vm20_vm0 = vcmask 59392   ;;  %vm28_vm1 = vcmask 61442   ;;  %vm36_vm2 = vcmask 63492   ;;  %vm44_vm3 = vcmask 64518   ;;  %s1238_s0 = inlined_call_operand.vmem [shape: f32[13,13,8], index: 0, kind: input, shape index: {}]   ;;  %s1239_s1 = inlined_call_operand.vmem [shape: f32[50,8], index: 1, kind: output, shape index: {}]  }
   0x1   :  { %v8_v0 = vld [vmem:[%s1238_s0] sm:$0xff]  ;;  %v9_v1 = vld [vmem:[%s1238_s0 + $0x8] sm:$0x1f]  ;;  %v664_v2 = vld [vmem:[%s1238_s0 + $0x10] sm:$0xff]  ;;  %vm46_vm4 = vcmask 57344   ;;  %vm69_vm5 = vcmask 1040384  }
   0x2   :  { %v665_v3 = vld [vmem:[%s1238_s0 + $0x18] sm:$0x1f]  ;;  %v13_v4 = vmax.f32 %v8_v0, %v664_v2  ;;  %v666_v5 = vld [vmem:[%s1238_s0 + $0x20] sm:$0xff]  ;;  %v667_v6 = vld [vmem:[%s1238_s0 + $0x28] sm:$0x1f]  ;;  %vm71_vm6 = vcmask 1041408  }
   0x3   :  { %v14_v7 = vmax.f32 %v9_v1, %v665_v3  ;;  %v791_v8 = vld [vmem:[%s1238_s0 + $0x30] sm:$0xff]  ;;  %v669_v9 = vld [vmem:[%s1238_s0 + $0x38] sm:$0x1f]  ;;  %v802_v12 = vld [vmem:[%s1238_s0 + $0x40] sm:$0xff]  ;;  %vm73_vm7 = vcmask 1042432   ;;  %vm75_vm8 = vcmask 1043456  }
   0x4   :  { %v796_v10 = vmax.f32 %v13_v4, %v666_v5  ;;  %v84_v11 = vmax.f32 %v666_v5, %v791_v8  ;;  %v807_v13 = vld [vmem:[%s1238_s0 + $0x50] sm:$0xff]  ;;  %v85_v15 = vmax.f32 %v667_v6, %v669_v9  ;;  %v826_v33 = vld [vmem:[%s1238_s0 + $0x48] sm:$0x1f]  ;;  %vm77_vm9 = vcmask 1044480  }
   0x5   :  { %v19_v14 = vmax.f32 %v14_v7, %v667_v6  ;;  %v144_v16 = vmax.f32 %v802_v12, %v807_v13  ;;  %vm79_vm10 = vcmask 62464   ;;  %vm399_vm11 = vcmask 61440  }
   0x6   :  { %v21_v17 = vsel %vm20_vm0, %v796_v10, -inf  ;;  %v29_v18 = vsel %vm28_vm1, %v796_v10, -inf  ;;  %v37_v19 = vsel %vm36_vm2, %v796_v10, -inf  ;;  %v45_v20 = vsel %vm44_vm3, %v796_v10, -inf }
   0x7   :  { %v22_v21 = vrot.slane %v21_v17, 4  ;;  %v30_v22 = vrot.slane %v29_v18, 4  ;;  %v38_v23 = vrot.slane %v37_v19, 4  ;;  %v47_v24 = vsel %vm46_vm4, %v19_v14, -inf }
   0x8   :  { %v48_v25 = vmax.f32 %v45_v20, %v47_v24  ;;  %v55_v26 = vsel %vm20_vm0, %v19_v14, -inf  ;;  %v62_v27 = vsel %vm28_vm1, %v19_v14, -inf  ;;  %v89_v28 = vmax.f32 %v84_v11, %v802_v12 }
   0x9   :  { %v23_v29 = vmax.f32 %v21_v17, %v22_v21  ;;  %v31_v30 = vmax.f32 %v29_v18, %v30_v22  ;;  %v39_v31 = vmax.f32 %v37_v19, %v38_v23  ;;  %v56_v32 = vrot.slane %v55_v26, 4 }
   0xa   :  { %v49_v34 = vrot.slane %v48_v25, 4  ;;  %v63_v35 = vrot.slane %v62_v27, 4  ;;  %v90_v36 = vmax.f32 %v85_v15, %v826_v33  ;;  %v91_v37 = vsel %vm20_vm0, %v89_v28, -inf }
   0xb   :  { %v24_v38 = vrot.slane %v23_v29, 2  ;;  %v32_v39 = vrot.slane %v31_v30, 2  ;;  %v40_v40 = vrot.slane %v39_v31, 2  ;;  %v57_v41 = vmax.f32 %v55_v26, %v56_v32 }
   0xc   :  { %v50_v42 = vmax.f32 %v48_v25, %v49_v34  ;;  %v64_v43 = vmax.f32 %v62_v27, %v63_v35  ;;  %v92_v44 = vrot.slane %v91_v37, 4  ;;  %v98_v45 = vsel %vm28_vm1, %v89_v28, -inf  ;;  %v673_v27 = vld [vmem:[%s1238_s0 + $0x58] sm:$0x1f] }
   0xd   :  { %v25_v46 = vmax.f32 %v23_v29, %v24_v38  ;;  %v33_v47 = vmax.f32 %v31_v30, %v32_v39  ;;  %v41_v48 = vmax.f32 %v39_v31, %v40_v40  ;;  %v58_v49 = vrot.slane %v57_v41, 2  ;;  %v852_v39 = vld [vmem:[%s1238_s0 + $0x70] sm:$0xff] }
   0xe   :  { %v51_v50 = vrot.slane %v50_v42, 2  ;;  %v65_v51 = vrot.slane %v64_v43, 2  ;;  %v93_v52 = vmax.f32 %v91_v37, %v92_v44  ;;  %v99_v53 = vrot.slane %v98_v45, 4 }
   0xf   :  { %v26_v54 = vrot.slane %v25_v46, 1  ;;  %v34_v55 = vrot.slane %v33_v47, 1  ;;  %v42_v56 = vrot.slane %v41_v48, 1  ;;  %v59_v57 = vmax.f32 %v57_v41, %v58_v49 }
  0x10   :  { %v52_v58 = vmax.f32 %v50_v42, %v51_v50  ;;  %v66_v59 = vmax.f32 %v64_v43, %v65_v51  ;;  %v94_v60 = vrot.slane %v93_v52, 2  ;;  %v100_v61 = vmax.f32 %v98_v45, %v99_v53 }
  0x11   :  { %v27_v62 = vmax.f32 %v25_v46, %v26_v54  ;;  %v35_v63 = vmax.f32 %v33_v47, %v34_v55  ;;  %v43_v0 = vmax.f32 %v41_v48, %v42_v56  ;;  %v60_v1 = vrot.slane %v59_v57, 1  ;;  %v864_v46 = vld [vmem:[%s1238_s0 + $0x68] sm:$0x1f] }
  0x12   :  { %v53_v2 = vrot.slane %v52_v58, 1  ;;  %v67_v3 = vrot.slane %v66_v59, 1  ;;  %v95_v4 = vmax.f32 %v93_v52, %v94_v60  ;;  %v101_v5 = vrot.slane %v100_v61, 2 }
  0x13   :  { %v61_v6 = vmax.f32 %v59_v57, %v60_v1  ;;  %v70_v7 = vsel %vm69_vm5, %v27_v62, %v35_v63  ;;  %v105_v9 = vsel %vm36_vm2, %v89_v28, -inf  ;;  %v112_v11 = vsel %vm44_vm3, %v89_v28, -inf  ;;  %v844_v28 = vld [vmem:[%s1238_s0 + $0x60] sm:$0xff] }
  0x14   :  { %v54_v14 = vmax.f32 %v52_v58, %v53_v2  ;;  %v68_v15 = vmax.f32 %v66_v59, %v67_v3  ;;  %v72_v17 = vsel %vm71_vm6, %v70_v7, %v43_v0  ;;  %v96_v18 = vrot.slane %v95_v4, 1 }
  0x15   :  { %v102_v19 = vmax.f32 %v100_v61, %v101_v5  ;;  %v106_v20 = vrot.slane %v105_v9, 4  ;;  %v113_v21 = vsel %vm46_vm4, %v90_v36, -inf  ;;  %v121_v22 = vsel %vm20_vm0, %v90_v36, -inf }
  0x16   :  { %v74_v23 = vsel %vm73_vm7, %v72_v17, %v54_v14  ;;  %v97_v24 = vmax.f32 %v95_v4, %v96_v18  ;;  %v114_v25 = vmax.f32 %v112_v11, %v113_v21  ;;  %v122_v26 = vrot.slane %v121_v22, 4 }
  0x17   :  { %v76_v29 = vsel %vm75_vm8, %v74_v23, %v61_v6  ;;  %v103_v30 = vrot.slane %v102_v19, 1  ;;  %v107_v31 = vmax.f32 %v105_v9, %v106_v20  ;;  %v128_v32 = vsel %vm28_vm1, %v90_v36, -inf }
  0x18   :  { %v78_v34 = vsel %vm77_vm9, %v76_v29, %v68_v15  ;;  %v115_v35 = vrot.slane %v114_v25, 4  ;;  %v123_v37 = vmax.f32 %v121_v22, %v122_v26  ;;  %v129_v38 = vrot.slane %v128_v32, 4 }
  0x19   :  { %80 = vst.msk [vmem:[%s1239_s1] sm:$0x3f] %vm79_vm10, %v78_v34  ;;  %v104_v40 = vmax.f32 %v102_v19, %v103_v30  ;;  %v108_v41 = vrot.slane %v107_v31, 2  ;;  %v145_v42 = vmax.f32 %v826_v33, %v673_v27  ;;  %v619_v36 = vmax.f32 %v844_v28, %v807_v13 }
  0x1a   :  { %v116_v43 = vmax.f32 %v114_v25, %v115_v35  ;;  %v124_v44 = vrot.slane %v123_v37, 2  ;;  %v130_v45 = vmax.f32 %v128_v32, %v129_v38  ;;  %v870_v47 = vmax.f32 %v144_v16, %v844_v28  ;;  %v677_v32 = vld [vmem:[%s1238_s0 + $0x78] sm:$0x1f] }
  0x1b   :  { %v109_v48 = vmax.f32 %v107_v31, %v108_v41  ;;  %v135_v33 = vsel %vm69_vm5, %v97_v24, %v104_v40  ;;  %v150_v49 = vmax.f32 %v145_v42, %v864_v46  ;;  %v875_v50 = vmax.f32 %v619_v36, %v852_v39  ;;  %v898_v40 = vld [vmem:[%s1238_s0 + $0x80] sm:$0xff] }
  0x1c   :  { %v117_v51 = vrot.slane %v116_v43, 2  ;;  %v125_v52 = vmax.f32 %v123_v37, %v124_v44  ;;  %v131_v53 = vrot.slane %v130_v45, 2  ;;  %v151_v54 = vsel %vm20_vm0, %v870_v47, -inf }
  0x1d   :  { %v110_v55 = vrot.slane %v109_v48, 1  ;;  %v152_v56 = vrot.slane %v151_v54, 4  ;;  %v158_v16 = vsel %vm28_vm1, %v870_v47, -inf  ;;  %v165_v57 = vsel %vm36_vm2, %v870_v47, -inf }
  0x1e   :  { %v118_v58 = vmax.f32 %v116_v43, %v117_v51  ;;  %v126_v59 = vrot.slane %v125_v52, 1  ;;  %v132_v60 = vmax.f32 %v130_v45, %v131_v53  ;;  %v159_v61 = vrot.slane %v158_v16, 4  ;;  %v912_v53 = vld [vmem:[%s1238_s0 + $0x88] sm:$0x1f] }
  0x1f   :  { %v111_v62 = vmax.f32 %v109_v48, %v110_v55  ;;  %v153_v63 = vmax.f32 %v151_v54, %v152_v56  ;;  %v166_v0 = vrot.slane %v165_v57, 4  ;;  %v172_v1 = vsel %vm44_vm3, %v870_v47, -inf }
  0x20   :  { %v119_v2 = vrot.slane %v118_v58, 1  ;;  %v127_v3 = vmax.f32 %v125_v52, %v126_v59  ;;  %v133_v4 = vrot.slane %v132_v60, 1  ;;  %v160_v5 = vmax.f32 %v158_v16, %v159_v61 }
  0x21   :  { %v136_v6 = vsel %vm71_vm6, %v135_v33, %v111_v62  ;;  %v154_v7 = vrot.slane %v153_v63, 2  ;;  %v167_v9 = vmax.f32 %v165_v57, %v166_v0  ;;  %v173_v11 = vsel %vm46_vm4, %v150_v49, -inf }
  0x22   :  { %v120_v14 = vmax.f32 %v118_v58, %v119_v2  ;;  %v134_v15 = vmax.f32 %v132_v60, %v133_v4  ;;  %v161_v17 = vrot.slane %v160_v5, 2  ;;  %v174_v18 = vmax.f32 %v172_v1, %v173_v11 }
  0x23   :  { %v155_v19 = vmax.f32 %v153_v63, %v154_v7  ;;  %v168_v20 = vrot.slane %v167_v9, 2  ;;  %v181_v21 = vsel %vm20_vm0, %v150_v49, -inf  ;;  %v188_v22 = vsel %vm28_vm1, %v150_v49, -inf }
  0x24   :  { %v137_v23 = vsel %vm73_vm7, %v136_v6, %v120_v14  ;;  %v162_v24 = vmax.f32 %v160_v5, %v161_v17  ;;  %v175_v25 = vrot.slane %v174_v18, 4  ;;  %v182_v26 = vrot.slane %v181_v21, 4 }
  0x25   :  { %v138_v27 = vsel %vm75_vm8, %v137_v23, %v127_v3  ;;  %v156_v29 = vrot.slane %v155_v19, 1  ;;  %v169_v30 = vmax.f32 %v167_v9, %v168_v20  ;;  %v189_v31 = vrot.slane %v188_v22, 4 }
  0x26   :  { %v139_v34 = vsel %vm77_vm9, %v138_v27, %v134_v15  ;;  %v163_v35 = vrot.slane %v162_v24, 1  ;;  %v176_v37 = vmax.f32 %v174_v18, %v175_v25  ;;  %v183_v38 = vmax.f32 %v181_v21, %v182_v26  ;;  %v934_v21 = vld [vmem:[%s1238_s0 + $0x90] sm:$0xff] }
  0x27   :  { %140 = vst.msk [vmem:[%s1239_s1 + $0x6] sm:$0x3f] %vm79_vm10, %v139_v34  ;;  %v157_v41 = vmax.f32 %v155_v19, %v156_v29  ;;  %v170_v42 = vrot.slane %v169_v30, 1  ;;  %v190_v36 = vmax.f32 %v188_v22, %v189_v31  ;;  %v204_v43 = vmax.f32 %v844_v28, %v852_v39  ;;  %v681_v31 = vld [vmem:[%s1238_s0 + $0x98] sm:$0x1f] }
  0x28   :  { %v164_v44 = vmax.f32 %v162_v24, %v163_v35  ;;  %v177_v45 = vrot.slane %v176_v37, 2  ;;  %v184_v48 = vrot.slane %v183_v38, 2  ;;  %v205_v33 = vmax.f32 %v864_v46, %v677_v32 }
  0x29   :  { %v171_v49 = vmax.f32 %v169_v30, %v170_v42  ;;  %v191_v51 = vrot.slane %v190_v36, 2  ;;  %v627_v52 = vmax.f32 %v875_v50, %v898_v40  ;;  %v915_v54 = vmax.f32 %v204_v43, %v898_v40 }
  0x2a   :  { %v178_v55 = vmax.f32 %v176_v37, %v177_v45  ;;  %v185_v56 = vmax.f32 %v183_v38, %v184_v48  ;;  %v195_v16 = vsel %vm69_vm5, %v157_v41, %v164_v44  ;;  %v210_v57 = vmax.f32 %v205_v33, %v912_v53  ;;  %v950_v38 = vld [vmem:[%s1238_s0 + $0xa0] sm:$0xff] }
  0x2b   :  { %v192_v46 = vmax.f32 %v190_v36, %v191_v51  ;;  %v196_v58 = vsel %vm71_vm6, %v195_v16, %v171_v49  ;;  %v211_v50 = vsel %vm20_vm0, %v915_v54, -inf  ;;  %v218_v59 = vsel %vm28_vm1, %v915_v54, -inf  ;;  %v958_v49 = vld [vmem:[%s1238_s0 + $0xb0] sm:$0xff] }
  0x2c   :  { %v179_v60 = vrot.slane %v178_v55, 1  ;;  %v186_v61 = vrot.slane %v185_v56, 1  ;;  %v212_v62 = vrot.slane %v211_v50, 4  ;;  %v219_v63 = vrot.slane %v218_v59, 4 }
  0x2d   :  { %v193_v0 = vrot.slane %v192_v46, 1  ;;  %v225_v1 = vsel %vm36_vm2, %v915_v54, -inf  ;;  %v232_v2 = vsel %vm44_vm3, %v915_v54, -inf  ;;  %v233_v3 = vsel %vm46_vm4, %v210_v57, -inf }
  0x2e   :  { %v180_v4 = vmax.f32 %v178_v55, %v179_v60  ;;  %v187_v5 = vmax.f32 %v185_v56, %v186_v61  ;;  %v213_v6 = vmax.f32 %v211_v50, %v212_v62  ;;  %v220_v7 = vmax.f32 %v218_v59, %v219_v63 }
  0x2f   :  { %v194_v9 = vmax.f32 %v192_v46, %v193_v0  ;;  %v226_v11 = vrot.slane %v225_v1, 4  ;;  %v234_v14 = vmax.f32 %v232_v2, %v233_v3  ;;  %v241_v15 = vsel %vm20_vm0, %v210_v57, -inf }
  0x30   :  { %v197_v17 = vsel %vm73_vm7, %v196_v58, %v180_v4  ;;  %v214_v18 = vrot.slane %v213_v6, 2  ;;  %v221_v19 = vrot.slane %v220_v7, 2  ;;  %v242_v20 = vrot.slane %v241_v15, 4  ;;  %v683_v58 = vld [vmem:[%s1238_s0 + $0xa8] sm:$0x1f] }
  0x31   :  { %v198_v22 = vsel %vm75_vm8, %v197_v17, %v187_v5  ;;  %v227_v23 = vmax.f32 %v225_v1, %v226_v11  ;;  %v235_v24 = vrot.slane %v234_v14, 4  ;;  %v248_v25 = vsel %vm28_vm1, %v210_v57, -inf }
  0x32   :  { %v199_v26 = vsel %vm77_vm9, %v198_v22, %v194_v9  ;;  %v215_v27 = vmax.f32 %v213_v6, %v214_v18  ;;  %v222_v29 = vmax.f32 %v220_v7, %v221_v19  ;;  %v243_v30 = vmax.f32 %v241_v15, %v242_v20 }
  0x33   :  { %200 = vst.msk [vmem:[%s1239_s1 + $0xc] sm:$0x3f] %vm79_vm10, %v199_v26  ;;  %v228_v32 = vrot.slane %v227_v23, 2  ;;  %v236_v34 = vmax.f32 %v234_v14, %v235_v24  ;;  %v249_v35 = vrot.slane %v248_v25, 4  ;;  %v631_v37 = vmax.f32 %v627_v52, %v934_v21 }
  0x34   :  { %v216_v41 = vrot.slane %v215_v27, 1  ;;  %v223_v42 = vrot.slane %v222_v29, 1  ;;  %v244_v36 = vrot.slane %v243_v30, 2  ;;  %v264_v43 = vmax.f32 %v898_v40, %v934_v21 }
  0x35   :  { %v229_v44 = vmax.f32 %v227_v23, %v228_v32  ;;  %v237_v45 = vrot.slane %v236_v34, 2  ;;  %v250_v48 = vmax.f32 %v248_v25, %v249_v35  ;;  %v265_v33 = vmax.f32 %v912_v53, %v681_v31  ;;  %v991_v35 = vld [vmem:[%s1238_s0 + $0xc0] sm:$0xff] }
  0x36   :  { %v217_v51 = vmax.f32 %v215_v27, %v216_v41  ;;  %v224_v52 = vmax.f32 %v222_v29, %v223_v42  ;;  %v245_v55 = vmax.f32 %v243_v30, %v244_v36  ;;  %v635_v56 = vmax.f32 %v631_v37, %v950_v38 }
  0x37   :  { %v230_v16 = vrot.slane %v229_v44, 1  ;;  %v238_v57 = vmax.f32 %v236_v34, %v237_v45  ;;  %v251_v46 = vrot.slane %v250_v48, 2  ;;  %v965_v50 = vmax.f32 %v264_v43, %v950_v38  ;;  %v685_v34 = vld [vmem:[%s1238_s0 + $0xb8] sm:$0x1f] }
  0x38   :  { %v246_v53 = vrot.slane %v245_v55, 1  ;;  %v255_v59 = vsel %vm69_vm5, %v217_v51, %v224_v52  ;;  %v270_v60 = vmax.f32 %v265_v33, %v683_v58  ;;  %v969_v61 = vmax.f32 %v635_v56, %v958_v49  ;;  %v687_v33 = vld [vmem:[%s1238_s0 + $0xc8] sm:$0x1f] }
  0x39   :  { %v231_v62 = vmax.f32 %v229_v44, %v230_v16  ;;  %v239_v63 = vrot.slane %v238_v57, 1  ;;  %v252_v0 = vmax.f32 %v250_v48, %v251_v46  ;;  %v271_v1 = vsel %vm20_vm0, %v965_v50, -inf }
  0x3a   :  { %v247_v2 = vmax.f32 %v245_v55, %v246_v53  ;;  %v272_v3 = vrot.slane %v271_v1, 4  ;;  %v278_v4 = vsel %vm28_vm1, %v965_v50, -inf  ;;  %v285_v5 = vsel %vm36_vm2, %v965_v50, -inf }
  0x3b   :  { %v240_v6 = vmax.f32 %v238_v57, %v239_v63  ;;  %v253_v7 = vrot.slane %v252_v0, 1  ;;  %v256_v9 = vsel %vm71_vm6, %v255_v59, %v231_v62  ;;  %v279_v11 = vrot.slane %v278_v4, 4 }
  0x3c   :  { %v273_v14 = vmax.f32 %v271_v1, %v272_v3  ;;  %v286_v15 = vrot.slane %v285_v5, 4  ;;  %v292_v17 = vsel %vm44_vm3, %v965_v50, -inf  ;;  %v293_v18 = vsel %vm46_vm4, %v270_v60, -inf }
  0x3d   :  { %v254_v19 = vmax.f32 %v252_v0, %v253_v7  ;;  %v257_v20 = vsel %vm73_vm7, %v256_v9, %v240_v6  ;;  %v280_v22 = vmax.f32 %v278_v4, %v279_v11  ;;  %v294_v23 = vmax.f32 %v292_v17, %v293_v18 }
  0x3e   :  { %v258_v24 = vsel %vm75_vm8, %v257_v20, %v247_v2  ;;  %v274_v25 = vrot.slane %v273_v14, 2  ;;  %v287_v26 = vmax.f32 %v285_v5, %v286_v15  ;;  %v301_v27 = vsel %vm20_vm0, %v270_v60, -inf }
  0x3f   :  { %v259_v29 = vsel %vm77_vm9, %v258_v24, %v254_v19  ;;  %v281_v30 = vrot.slane %v280_v22, 2  ;;  %v295_v31 = vrot.slane %v294_v23, 4  ;;  %v302_v32 = vrot.slane %v301_v27, 4 }
  0x40   :  { %260 = vst.msk [vmem:[%s1239_s1 + $0x12] sm:$0x3f] %vm79_vm10, %v259_v29  ;;  %v275_v37 = vmax.f32 %v273_v14, %v274_v25  ;;  %v288_v41 = vrot.slane %v287_v26, 2  ;;  %v308_v42 = vsel %vm28_vm1, %v270_v60, -inf  ;;  %v324_v36 = vmax.f32 %v950_v38, %v958_v49 }
  0x41   :  { %v282_v43 = vmax.f32 %v280_v22, %v281_v30  ;;  %v296_v44 = vmax.f32 %v294_v23, %v295_v31  ;;  %v303_v45 = vmax.f32 %v301_v27, %v302_v32  ;;  %v309_v48 = vrot.slane %v308_v42, 4 }
  0x42   :  { %v276_v51 = vrot.slane %v275_v37, 1  ;;  %v289_v52 = vmax.f32 %v287_v26, %v288_v41  ;;  %v325_v55 = vmax.f32 %v683_v58, %v685_v34  ;;  %v643_v56 = vmax.f32 %v969_v61, %v991_v35  ;;  %v749_v61 = vld [vmem:[%s1238_s0 + $0x78] sm:$0x1f] }
  0x43   :  { %v283_v16 = vrot.slane %v282_v43, 1  ;;  %v297_v57 = vrot.slane %v296_v44, 2  ;;  %v304_v46 = vrot.slane %v303_v45, 2  ;;  %v310_v53 = vmax.f32 %v308_v42, %v309_v48 }
  0x44   :  { %v277_v59 = vmax.f32 %v275_v37, %v276_v51  ;;  %v290_v60 = vrot.slane %v289_v52, 1  ;;  %v329_v62 = vmax.f32 %v324_v36, %v991_v35  ;;  %v330_v63 = vmax.f32 %v325_v55, %v687_v33  ;;  %v382_v37 = vld [vmem:[%s1238_s0 + $0x8] sm:$0x1f] }
  0x45   :  { %v284_v0 = vmax.f32 %v282_v43, %v283_v16  ;;  %v298_v1 = vmax.f32 %v296_v44, %v297_v57  ;;  %v305_v2 = vmax.f32 %v303_v45, %v304_v46  ;;  %v311_v3 = vrot.slane %v310_v53, 2  ;;  %v689_v44 = vld [vmem:[%s1238_s0 + $0x18] sm:$0x1f]  ;;  %v691_v46 = vld [vmem:[%s1238_s0 + $0x28] sm:$0x1f] }
  0x46   :  { %v291_v4 = vmax.f32 %v289_v52, %v290_v60  ;;  %v331_v5 = vsel %vm20_vm0, %v329_v62, -inf  ;;  %v338_v58 = vsel %vm28_vm1, %v329_v62, -inf  ;;  %v345_v6 = vsel %vm36_vm2, %v329_v62, -inf }
  0x47   :  { %v299_v7 = vrot.slane %v298_v1, 1  ;;  %v306_v9 = vrot.slane %v305_v2, 1  ;;  %v312_v11 = vmax.f32 %v310_v53, %v311_v3  ;;  %v315_v14 = vsel %vm69_vm5, %v277_v59, %v284_v0  ;;  %v693_v3 = vld [vmem:[%s1238_s0 + $0x38] sm:$0x1f] }
  0x48   :  { %v316_v15 = vsel %vm71_vm6, %v315_v14, %v291_v4  ;;  %v332_v17 = vrot.slane %v331_v5, 4  ;;  %v339_v18 = vrot.slane %v338_v58, 4  ;;  %v346_v19 = vrot.slane %v345_v6, 4 }
  0x49   :  { %v300_v20 = vmax.f32 %v298_v1, %v299_v7  ;;  %v307_v22 = vmax.f32 %v305_v2, %v306_v9  ;;  %v313_v23 = vrot.slane %v312_v11, 1  ;;  %v352_v24 = vsel %vm44_vm3, %v329_v62, -inf }
  0x4a   :  { %v333_v25 = vmax.f32 %v331_v5, %v332_v17  ;;  %v340_v26 = vmax.f32 %v338_v58, %v339_v18  ;;  %v347_v27 = vmax.f32 %v345_v6, %v346_v19  ;;  %v353_v29 = vsel %vm46_vm4, %v330_v63, -inf  ;;  %v695_v17 = vld [vmem:[%s1238_s0 + $0x48] sm:$0x1f]  ;;  %v697_v19 = vld [vmem:[%s1238_s0 + $0x58] sm:$0x1f] }
  0x4b   :  { %v314_v30 = vmax.f32 %v312_v11, %v313_v23  ;;  %v317_v31 = vsel %vm73_vm7, %v316_v15, %v300_v20  ;;  %v354_v32 = vmax.f32 %v352_v24, %v353_v29  ;;  %v361_v34 = vsel %vm20_vm0, %v330_v63, -inf }
  0x4c   :  { %v318_v41 = vsel %vm75_vm8, %v317_v31, %v307_v22  ;;  %v334_v42 = vrot.slane %v333_v25, 2  ;;  %v341_v36 = vrot.slane %v340_v26, 2  ;;  %v348_v43 = vrot.slane %v347_v27, 2 }
  0x4d   :  { %v319_v45 = vsel %vm77_vm9, %v318_v41, %v314_v30  ;;  %v355_v48 = vrot.slane %v354_v32, 4  ;;  %v362_v33 = vrot.slane %v361_v34, 4  ;;  %v368_v51 = vsel %vm28_vm1, %v330_v63, -inf }
  0x4e   :  { %320 = vst.msk [vmem:[%s1239_s1 + $0x18] sm:$0x3f] %vm79_vm10, %v319_v45  ;;  %v335_v52 = vmax.f32 %v333_v25, %v334_v42  ;;  %v342_v55 = vmax.f32 %v340_v26, %v341_v36  ;;  %v349_v16 = vmax.f32 %v347_v27, %v348_v43  ;;  %v369_v57 = vrot.slane %v368_v51, 4  ;;  %v699_v27 = vld [vmem:[%s1238_s0 + $0x68] sm:$0x1f] }
  0x4f   :  { %v356_v53 = vmax.f32 %v354_v32, %v355_v48  ;;  %v363_v59 = vmax.f32 %v361_v34, %v362_v33  ;;  %v386_v60 = vmax.f32 %v382_v37, %v689_v44  ;;  %v393_v62 = vmax.f32 %v796_v10, %v791_v8  ;;  %v703_v34 = vld [vmem:[%s1238_s0 + $0x88] sm:$0x1f]  ;;  %v705_v37 = vld [vmem:[%s1238_s0 + $0x98] sm:$0x1f] }
  0x50   :  { %v336_v63 = vrot.slane %v335_v52, 1  ;;  %v343_v0 = vrot.slane %v342_v55, 1  ;;  %v350_v1 = vrot.slane %v349_v16, 1  ;;  %v370_v2 = vmax.f32 %v368_v51, %v369_v57  ;;  %v701_v51 = vld [vmem:[%s1238_s0 + $0x78] sm:$0x1f] }
  0x51   :  { %v357_v4 = vrot.slane %v356_v53, 2  ;;  %v364_v5 = vrot.slane %v363_v59, 2  ;;  %v390_v58 = vmax.f32 %v386_v60, %v691_v46  ;;  %v1037_v6 = vmax.f32 %v393_v62, %v802_v12 }
  0x52   :  { %v337_v7 = vmax.f32 %v335_v52, %v336_v63  ;;  %v344_v9 = vmax.f32 %v342_v55, %v343_v0  ;;  %v351_v11 = vmax.f32 %v349_v16, %v350_v1  ;;  %v371_v14 = vrot.slane %v370_v2, 2  ;;  %v707_v52 = vld [vmem:[%s1238_s0 + $0xa8] sm:$0x1f]  ;;  %v709_v63 = vld [vmem:[%s1238_s0 + $0xb8] sm:$0x1f] }
  0x53   :  { %v358_v15 = vmax.f32 %v356_v53, %v357_v4  ;;  %v365_v8 = vmax.f32 %v363_v59, %v364_v5  ;;  %v394_v10 = vmax.f32 %v390_v58, %v693_v3  ;;  %v400_v18 = vsel %vm399_vm11, %v1037_v6, -inf  ;;  %v711_v58 = vld [vmem:[%s1238_s0 + $0xc8] sm:$0x1f] }
  0x54   :  { %v372_v12 = vmax.f32 %v370_v2, %v371_v14  ;;  %v375_v20 = vsel %vm69_vm5, %v337_v7, %v344_v9  ;;  %v401_v22 = vrot.slane %v400_v18, 4  ;;  %vm407_vm12 = vcmask 64516  }
  0x55   :  { %v359_v23 = vrot.slane %v358_v15, 1  ;;  %v366_v24 = vrot.slane %v365_v8, 1  ;;  %v376_v25 = vsel %vm71_vm6, %v375_v20, %v351_v11  ;;  %v398_v26 = vmax.f32 %v394_v10, %v695_v17 }
  0x56   :  { %v373_v29 = vrot.slane %v372_v12, 1  ;;  %v402_v30 = vmax.f32 %v400_v18, %v401_v22  ;;  %v408_v31 = vsel %vm407_vm12, %v1037_v6, -inf  ;;  %v430_v32 = vmax.f32 %v695_v17, %v697_v19 }
  0x57   :  { %v360_v41 = vmax.f32 %v358_v15, %v359_v23  ;;  %v367_v42 = vmax.f32 %v365_v8, %v366_v24  ;;  %v409_v36 = vsel %vm46_vm4, %v398_v26, -inf  ;;  %v417_v43 = vsel %vm399_vm11, %v398_v26, -inf }
  0x58   :  { %v374_v44 = vmax.f32 %v372_v12, %v373_v29  ;;  %v403_v45 = vrot.slane %v402_v30, 2  ;;  %v410_v48 = vmax.f32 %v408_v31, %v409_v36  ;;  %v418_v33 = vrot.slane %v417_v43, 4  ;;  %v512_v29 = vld [vmem:[%s1238_s0 + $0x8] sm:$0x1f] }
  0x59   :  { %v377_v55 = vsel %vm73_vm7, %v376_v25, %v360_v41  ;;  %v434_v16 = vmax.f32 %v430_v32, %v699_v27  ;;  %v437_v57 = vmax.f32 %v870_v47, %v852_v39  ;;  %v472_v46 = vmax.f32 %v703_v34, %v705_v37  ;;  %v713_v37 = vld [vmem:[%s1238_s0 + $0x18] sm:$0x1f] }
  0x5a   :  { %v378_v53 = vsel %vm75_vm8, %v377_v55, %v367_v42  ;;  %v404_v59 = vmax.f32 %v402_v30, %v403_v45  ;;  %v411_v60 = vrot.slane %v410_v48, 4  ;;  %v419_v62 = vmax.f32 %v417_v43, %v418_v33 }
  0x5b   :  { %v379_v0 = vsel %vm77_vm9, %v378_v53, %v374_v44  ;;  %v438_v1 = vmax.f32 %v434_v16, %v701_v51  ;;  %v441_v2 = vmax.f32 %v437_v57, %v898_v40  ;;  %v476_v3 = vmax.f32 %v472_v46, %v707_v52  ;;  %v715_v57 = vld [vmem:[%s1238_s0 + $0x28] sm:$0x1f] }
  0x5c   :  { %380 = vst.msk [vmem:[%s1239_s1 + $0x1e] sm:$0x3f] %vm79_vm10, %v379_v0  ;;  %v405_v39 = vrot.slane %v404_v59, 1  ;;  %v412_v47 = vmax.f32 %v410_v48, %v411_v60  ;;  %v420_v4 = vrot.slane %v419_v62, 2  ;;  %v479_v5 = vmax.f32 %v965_v50, %v958_v49 }
  0x5d   :  { %v442_v7 = vmax.f32 %v438_v1, %v703_v34  ;;  %v443_v9 = vsel %vm399_vm11, %v441_v2, -inf  ;;  %v450_v40 = vsel %vm407_vm12, %v441_v2, -inf  ;;  %v480_v11 = vmax.f32 %v476_v3, %v709_v63  ;;  %v717_v2 = vld [vmem:[%s1238_s0 + $0x38] sm:$0x1f] }
  0x5e   :  { %v406_v14 = vmax.f32 %v404_v59, %v405_v39  ;;  %v413_v15 = vrot.slane %v412_v47, 2  ;;  %v421_v8 = vmax.f32 %v419_v62, %v420_v4  ;;  %v444_v10 = vrot.slane %v443_v9, 4 }
  0x5f   :  { %v451_v17 = vsel %vm46_vm4, %v442_v7, -inf  ;;  %v459_v18 = vsel %vm399_vm11, %v442_v7, -inf  ;;  %v483_v50 = vmax.f32 %v479_v5, %v991_v35  ;;  %v484_v19 = vmax.f32 %v480_v11, %v711_v58 }
  0x60   :  { %v414_v12 = vmax.f32 %v412_v47, %v413_v15  ;;  %v422_v20 = vrot.slane %v421_v8, 1  ;;  %v445_v22 = vmax.f32 %v443_v9, %v444_v10  ;;  %v452_v23 = vmax.f32 %v450_v40, %v451_v17  ;;  %v719_v9 = vld [vmem:[%s1238_s0 + $0x48] sm:$0x1f] }
  0x61   :  { %v460_v24 = vrot.slane %v459_v18, 4  ;;  %v485_v25 = vsel %vm399_vm11, %v483_v50, -inf  ;;  %v492_v26 = vsel %vm407_vm12, %v483_v50, -inf  ;;  %v493_v27 = vsel %vm46_vm4, %v484_v19, -inf  ;;  %v723_v50 = vld [vmem:[%s1238_s0 + $0x68] sm:$0x1f] }
  0x62   :  { %v415_v30 = vrot.slane %v414_v12, 1  ;;  %v423_v31 = vmax.f32 %v421_v8, %v422_v20  ;;  %v446_v32 = vrot.slane %v445_v22, 2  ;;  %v453_v34 = vrot.slane %v452_v23, 4 }
  0x63   :  { %v461_v41 = vmax.f32 %v459_v18, %v460_v24  ;;  %v486_v42 = vrot.slane %v485_v25, 4  ;;  %v494_v36 = vmax.f32 %v492_v26, %v493_v27  ;;  %v501_v43 = vsel %vm399_vm11, %v484_v19, -inf  ;;  %v721_v18 = vld [vmem:[%s1238_s0 + $0x58] sm:$0x1f]  ;;  %v736_v27 = vld [vmem:[%s1238_s0 + $0x10] sm:$0xff] }
  0x64   :  { %v416_v44 = vmax.f32 %v414_v12, %v415_v30  ;;  %v447_v45 = vmax.f32 %v445_v22, %v446_v32  ;;  %v454_v48 = vmax.f32 %v452_v23, %v453_v34  ;;  %v502_v33 = vrot.slane %v501_v43, 4  ;;  %v599_v22 = vld [vmem:[%s1238_s0] sm:$0xff]  ;;  %v600_v23 = vld [vmem:[%s1238_s0 + $0x8] sm:$0x1f] }
  0x65   :  { %v462_v51 = vrot.slane %v461_v41, 2  ;;  %v487_v52 = vmax.f32 %v485_v25, %v486_v42  ;;  %v495_v55 = vrot.slane %v494_v36, 4  ;;  %v516_v16 = vmax.f32 %v512_v29, %v713_v37  ;;  %v737_v29 = vld [vmem:[%s1238_s0 + $0x18] sm:$0x1f]  ;;  %v727_v37 = vld [vmem:[%s1238_s0 + $0x88] sm:$0x1f] }
  0x66   :  { %v424_v46 = vsel %vm69_vm5, %v406_v14, %v416_v44  ;;  %v448_v53 = vrot.slane %v447_v45, 1  ;;  %v455_v59 = vrot.slane %v454_v48, 2  ;;  %v503_v60 = vmax.f32 %v501_v43, %v502_v33  ;;  %v738_v44 = vld [vmem:[%s1238_s0 + $0x20] sm:$0xff]  ;;  %v729_v33 = vld [vmem:[%s1238_s0 + $0x98] sm:$0x1f] }
  0x67   :  { %v425_v62 = vsel %vm71_vm6, %v424_v46, %v423_v31  ;;  %v463_v63 = vmax.f32 %v461_v41, %v462_v51  ;;  %v488_v0 = vrot.slane %v487_v52, 2  ;;  %v496_v1 = vmax.f32 %v494_v36, %v495_v55 }
  0x68   :  { %426 = vst.msk [vmem:[%s1239_s1 + $0x24] sm:$0x7] %vm20_vm0, %v425_v62  ;;  %v449_v3 = vmax.f32 %v447_v45, %v448_v53  ;;  %v456_v39 = vmax.f32 %v454_v48, %v455_v59  ;;  %v504_v47 = vrot.slane %v503_v60, 2  ;;  %v520_v4 = vmax.f32 %v516_v16, %v715_v57  ;;  %v740_v57 = vld [vmem:[%s1238_s0 + $0x30] sm:$0xff] }
  0x69   :  { %v464_v5 = vrot.slane %v463_v63, 1  ;;  %v489_v58 = vmax.f32 %v487_v52, %v488_v0  ;;  %v497_v7 = vrot.slane %v496_v1, 2  ;;  %v531_v40 = vmax.f32 %v1037_v6, %v807_v13  ;;  %v725_v6 = vld [vmem:[%s1238_s0 + $0x78] sm:$0x1f] }
  0x6a   :  { %v457_v11 = vrot.slane %v456_v39, 1  ;;  %v505_v14 = vmax.f32 %v503_v60, %v504_v47  ;;  %v524_v15 = vmax.f32 %v520_v4, %v717_v2  ;;  %vm537_vm13 = vcmask 63488   ;;  %v731_v60 = vld [vmem:[%s1238_s0 + $0xa8] sm:$0x1f]  ;;  %v733_v47 = vld [vmem:[%s1238_s0 + $0xb8] sm:$0x1f] }
  0x6b   :  { %v465_v8 = vmax.f32 %v463_v63, %v464_v5  ;;  %v490_v10 = vrot.slane %v489_v58, 1  ;;  %v498_v17 = vmax.f32 %v496_v1, %v497_v7  ;;  %v535_v19 = vmax.f32 %v531_v40, %v844_v28  ;;  %v741_v63 = vld [vmem:[%s1238_s0 + $0x38] sm:$0x1f]  ;;  %v735_v40 = vld [vmem:[%s1238_s0 + $0xc8] sm:$0x1f] }
  0x6c   :  { %v458_v12 = vmax.f32 %v456_v39, %v457_v11  ;;  %v506_v20 = vrot.slane %v505_v14, 1  ;;  %v528_v13 = vmax.f32 %v524_v15, %v719_v9  ;;  %v560_v36 = vmax.f32 %v723_v50, %v725_v6  ;;  %v747_v6 = vld [vmem:[%s1238_s0 + $0x68] sm:$0x1f] }
  0x6d   :  { %v491_v24 = vmax.f32 %v489_v58, %v490_v10  ;;  %v499_v25 = vrot.slane %v498_v17, 1  ;;  %v538_v26 = vsel %vm537_vm13, %v535_v19, -inf  ;;  %v545_v28 = vsel %vm44_vm3, %v535_v19, -inf  ;;  %v745_v10 = vld [vmem:[%s1238_s0 + $0x58] sm:$0x1f] }
  0x6e   :  { %v466_v30 = vsel %vm69_vm5, %v449_v3, %v458_v12  ;;  %v507_v31 = vmax.f32 %v505_v14, %v506_v20  ;;  %v532_v32 = vmax.f32 %v528_v13, %v721_v18  ;;  %v539_v34 = vrot.slane %v538_v26, 4  ;;  %v742_v3 = vld [vmem:[%s1238_s0 + $0x40] sm:$0xff] }
  0x6f   :  { %v467_v41 = vsel %vm71_vm6, %v466_v30, %v465_v8  ;;  %v500_v42 = vmax.f32 %v498_v17, %v499_v25  ;;  %v567_v43 = vmax.f32 %v915_v54, %v934_v21  ;;  %v603_v51 = vmax.f32 %v599_v22, %v736_v27  ;;  %v739_v54 = vld [vmem:[%s1238_s0 + $0x28] sm:$0x1f] }
  0x70   :  { %468 = vst.msk [vmem:[%s1239_s1 + $0x27] sm:$0x7] %vm20_vm0, %v467_v41  ;;  %v536_v45 = vmax.f32 %v532_v32, %v723_v50  ;;  %v540_v48 = vmax.f32 %v538_v26, %v539_v34  ;;  %v604_v52 = vmax.f32 %v600_v23, %v737_v29  ;;  %v564_v55 = vmax.f32 %v560_v36, %v727_v37  ;;  %v751_v29 = vld [vmem:[%s1238_s0 + $0x88] sm:$0x1f]  ;;  %v753_v37 = vld [vmem:[%s1238_s0 + $0x98] sm:$0x1f] }
  0x71   :  { %v508_v21 = vsel %vm69_vm5, %v491_v24, %v500_v42  ;;  %v571_v16 = vmax.f32 %v567_v43, %v950_v38  ;;  %v607_v62 = vmax.f32 %v603_v51, %v738_v44  ;;  %vm555_vm14 = vcmask 58368   ;;  %v755_v43 = vld [vmem:[%s1238_s0 + $0xa8] sm:$0x1f] }
  0x72   :  { %v509_v46 = vsel %vm71_vm6, %v508_v21, %v507_v31  ;;  %v541_v53 = vrot.slane %v540_v48, 2  ;;  %v546_v59 = vsel %vm399_vm11, %v536_v45, -inf  ;;  %v568_v0 = vmax.f32 %v564_v55, %v729_v33  ;;  %v757_v33 = vld [vmem:[%s1238_s0 + $0xb8] sm:$0x1f] }
  0x73   :  { %510 = vst.msk [vmem:[%s1239_s1 + $0x2a] sm:$0x7] %vm20_vm0, %v509_v46  ;;  %v547_v38 = vmax.f32 %v545_v28, %v546_v59  ;;  %v575_v1 = vmax.f32 %v571_v16, %v958_v49  ;;  %v608_v2 = vmax.f32 %v604_v52, %v739_v54  ;;  %v611_v4 = vmax.f32 %v607_v62, %v740_v57  ;;  %v743_v49 = vld [vmem:[%s1238_s0 + $0x48] sm:$0x1f] }
  0x74   :  { %v542_v39 = vmax.f32 %v540_v48, %v541_v53  ;;  %v572_v58 = vmax.f32 %v568_v0, %v731_v60  ;;  %v759_v54 = vld [vmem:[%s1238_s0 + $0xc8] sm:$0x1f]  ;;  %vm649_vm15 = vcmask 64512  }
  0x75   :  { %v548_v5 = vrot.slane %v547_v38, 4  ;;  %v579_v7 = vmax.f32 %v575_v1, %v991_v35  ;;  %v612_v9 = vmax.f32 %v608_v2, %v741_v63  ;;  %v615_v11 = vmax.f32 %v611_v4, %v742_v3 }
  0x76   :  { %v576_v15 = vmax.f32 %v572_v58, %v733_v47  ;;  %v543_v19 = vrot.slane %v542_v39, 1 }
  0x77   :  { %v549_v14 = vmax.f32 %v547_v38, %v548_v5  ;;  %v581_v8 = vsel %vm537_vm13, %v579_v7, -inf  ;;  %v647_v18 = vmax.f32 %v643_v56, %v615_v11  ;;  %v616_v50 = vmax.f32 %v612_v9, %v743_v49 }
  0x78   :  { %v582_v17 = vrot.slane %v581_v8, 4  ;;  %v580_v20 = vmax.f32 %v576_v15, %v735_v40  ;;  %v588_v13 = vsel %vm44_vm3, %v579_v7, -inf  ;;  %v544_v28 = vmax.f32 %v542_v39, %v543_v19 }
  0x79   :  { %v550_v12 = vrot.slane %v549_v14, 2  ;;  %v620_v23 = vmax.f32 %v616_v50, %v745_v10  ;;  %v650_v53 = vsel %vm649_vm15, %v647_v18, -inf }
  0x7a   :  { %v583_v22 = vmax.f32 %v581_v8, %v582_v17  ;;  %v589_v25 = vsel %vm399_vm11, %v580_v20, -inf }
  0x7b   :  { %v551_v24 = vmax.f32 %v549_v14, %v550_v12  ;;  %v590_v56 = vmax.f32 %v588_v13, %v589_v25  ;;  %v624_v26 = vmax.f32 %v620_v23, %v747_v6 }
  0x7c   :  { %v584_v35 = vrot.slane %v583_v22, 2 }
  0x7d   :  { %v552_v27 = vrot.slane %v551_v24, 1  ;;  %v591_v31 = vrot.slane %v590_v56, 4  ;;  %v628_v32 = vmax.f32 %v624_v26, %v749_v61 }
  0x7e   :  { %v585_v30 = vmax.f32 %v583_v22, %v584_v35 }
  0x7f   :  { %v553_v34 = vmax.f32 %v551_v24, %v552_v27  ;;  %v592_v41 = vmax.f32 %v590_v56, %v591_v31  ;;  %v632_v42 = vmax.f32 %v628_v32, %v751_v29 }
  0x80   :  { %v586_v44 = vrot.slane %v585_v30, 1 }
  0x81   :  { %v554_v36 = vsel %vm69_vm5, %v544_v28, %v553_v34  ;;  %v593_v45 = vrot.slane %v592_v41, 2  ;;  %v636_v48 = vmax.f32 %v632_v42, %v753_v37 }
  0x82   :  { %556 = vst.msk [vmem:[%s1239_s1 + $0x2d] sm:$0x3] %vm555_vm14, %v554_v36  ;;  %v587_v21 = vmax.f32 %v585_v30, %v586_v44 }
  0x83   :  { %v594_v51 = vmax.f32 %v592_v41, %v593_v45  ;;  %v640_v52 = vmax.f32 %v636_v48, %v755_v43 }
  0x85   :  { %v595_v55 = vrot.slane %v594_v51, 1  ;;  %v644_v16 = vmax.f32 %v640_v52, %v757_v33 }
  0x87   :  { %v596_v57 = vmax.f32 %v594_v51, %v595_v55  ;;  %v648_v46 = vmax.f32 %v644_v16, %v759_v54 }
  0x89   :  { %v597_v59 = vsel %vm69_vm5, %v587_v21, %v596_v57  ;;  %v651_v60 = vsel %vm399_vm11, %v648_v46, -inf }
  0x8a   :  { %598 = vst.msk [vmem:[%s1239_s1 + $0x2f] sm:$0x3] %vm555_vm14, %v597_v59  ;;  %v652_v62 = vmax.f32 %v650_v53, %v651_v60 }
  0x8c   :  { %v653_v63 = vrot.slane %v652_v62, 4 }
  0x8e   :  { %v654_v38 = vmax.f32 %v652_v62, %v653_v63 }
  0x90   :  { %v655_v0 = vrot.slane %v654_v38, 2 }
  0x92   :  { %v656_v1 = vmax.f32 %v654_v38, %v655_v0 }
  0x94   :  { %v657_v2 = vrot.slane %v656_v1, 1 }
  0x96   :  { %v658_v3 = vmax.f32 %v656_v1, %v657_v2 }
  0x98   :  { %659 = vst.msk [vmem:[%s1239_s1 + $0x31] sm:$0x1] %vm46_vm4, %v658_v3 }

</bundles_post_ra>
